<compile_context>
chip_gen: v5e
topology: v5e:2x2
jax: 0.10.0
libtpu: 0.0.40
codegen_flags: <defaults>
</compile_context>

<pallas_src>
import math

import jax
import jax.numpy as jnp
from jax.experimental import pallas as pl
from jax.experimental.pallas import tpu as pltpu

# ---------------- small BERT config (synthetic) ----------------
VOCAB = 100
HIDDEN = 32
NUM_LAYERS = 2
NUM_HEADS = 4
HEAD_DIM = HIDDEN // NUM_HEADS
INTERMEDIATE = 64
MAX_POS = 64
TYPE_VOCAB = 2
LN_EPS = 1e-12
NEG_INF = -1e9  # additive attention-mask bias for padded keys


# ---------------- in-kernel math helpers (operate on values) ----------------
def _erf_f32(x):
    # Exactly the Eigen/XLA float32 erf rational approximation
    # (alpha_1..alpha_13 / beta_0..beta_8), so semantics match XLA's erf.
    x = jnp.clip(x, -4.0, 4.0)
    x2 = x * x
    p = x2 * -2.72614225801306e-10 + 2.77068142495902e-08
    p = x2 * p + -2.10102402082508e-06
    p = x2 * p + -5.69250639462346e-05
    p = x2 * p + -7.34990630326855e-04
    p = x2 * p + -2.95459980854025e-03
    p = x2 * p + -1.60960333262415e-02
    p = x * p
    q = x2 * -1.45660718464996e-05 + -2.13374055278905e-04
    q = x2 * q + -1.68282697438203e-03
    q = x2 * q + -7.37332916720468e-03
    q = x2 * q + -1.42647390514189e-02
    # Route the divide to the EUP reciprocal (separate VLIW slot from the VPU poly).
    return p * pl.reciprocal(q, approx=True)


def _gelu(y):  # BERT "gelu" = exact erf gelu
    return 0.5 * y * (1.0 + _erf_f32(y * (1.0 / math.sqrt(2.0))))


def _layernorm(y, g, b):
    mean = jnp.mean(y, axis=-1, keepdims=True)
    cen = y - mean
    var = jnp.mean(cen * cen, axis=-1, keepdims=True)
    return cen * jax.lax.rsqrt(var + LN_EPS) * g + b


# ---------------- the fused per-batch encoder kernel ----------------
def _encoder_kernel(emb_ref, maskb_ref, eg_ref, eb_ref,
                    wqkv_ref, bqkv_ref, wo_ref, bo_ref,
                    ln1g_ref, ln1b_ref,
                    w1_ref, b1_ref, w2_ref, b2_ref,
                    ln2g_ref, ln2b_ref,
                    out_ref):
    scale = 1.0 / math.sqrt(HEAD_DIM)

    # Embedding LayerNorm (no dummy zero residual).
    x = _layernorm(emb_ref[...], eg_ref[...], eb_ref[...])        # (S, H)
    bias = maskb_ref[...]                                         # (1, 1, S) key bias

    # TODO(synk): at real BERT sizes (H=768, L=12) the layer loop should become a
    # grid axis ("arbitrary") with per-layer weight BlockSpecs + bf16 weights so
    # layer l+1 weights stream while layer l computes (VMEM budget on v7x).
    for l in range(NUM_LAYERS):
        # ---- self-attention block --------------------------------------
        # Fused Q|K|V projection: one (S, H) @ (H, 3H) matmul.
        qkv = jnp.dot(x, wqkv_ref[l],
                      preferred_element_type=jnp.float32) + bqkv_ref[l]   # (S, 3H)

        # Assemble head-batched Q/K/V: (NUM_HEADS, S, HEAD_DIM) each.
        q = jnp.stack([qkv[:, h * HEAD_DIM:(h + 1) * HEAD_DIM]
                       for h in range(NUM_HEADS)], axis=0)
        k = jnp.stack([qkv[:, HIDDEN + h * HEAD_DIM:HIDDEN + (h + 1) * HEAD_DIM]
                       for h in range(NUM_HEADS)], axis=0)
        v = jnp.stack([qkv[:, 2 * HIDDEN + h * HEAD_DIM:2 * HIDDEN + (h + 1) * HEAD_DIM]
                       for h in range(NUM_HEADS)], axis=0)

        # All heads at once: one batched score matmul, one batched softmax,
        # one batched P@V (replaces the old per-(batch, head) unroll).
        s = jnp.einsum('hqd,hkd->hqk', q, k,
                       preferred_element_type=jnp.float32) * scale + bias  # (NH,S,S)
        s = s - jnp.max(s, axis=-1, keepdims=True)
        p = jnp.exp(s)
        p = p * pl.reciprocal(jnp.sum(p, axis=-1, keepdims=True), approx=True)
        ctx = jnp.einsum('hqk,hkd->hqd', p, v,
                         preferred_element_type=jnp.float32)               # (NH,S,HD)

        # Merge heads along lanes; single (S,H)@(H,H) output projection.
        ctx2d = jnp.concatenate([ctx[h] for h in range(NUM_HEADS)], axis=-1)  # (S, H)
        attn = jnp.dot(ctx2d, wo_ref[l],
                       preferred_element_type=jnp.float32) + bo_ref[l]

        # Residual add + LayerNorm fused (no HBM round trip).
        x = _layernorm(attn + x, ln1g_ref[l], ln1b_ref[l])

        # ---- feed-forward block (FF1 + GELU + FF2 + add + LN fused) -----
        hmid = _gelu(jnp.dot(x, w1_ref[l],
                             preferred_element_type=jnp.float32) + b1_ref[l])
        ffn = jnp.dot(hmid, w2_ref[l],
                      preferred_element_type=jnp.float32) + b2_ref[l]
        x = _layernorm(ffn + x, ln2g_ref[l], ln2b_ref[l])

    # TODO(synk): dropout layers are identity in eval mode; nothing to emit.
    # Single CLS block store per grid step: out[b, 0, :] = last_hidden[b, 0, :].
    out_ref[0] = x[0:1, :]


# ---------------- parameters (deterministic synthetic init) ----------------
def init_params(key):
    def nxt():
        nonlocal key
        key, sub = jax.random.split(key)
        return sub

    def w(shape):
        return 0.02 * jax.random.normal(nxt(), shape, dtype=jnp.float32)

    L, H, I = NUM_LAYERS, HIDDEN, INTERMEDIATE
    return {
        "word_emb": w((VOCAB, H)),
        "pos_emb": w((MAX_POS, H)),
        "type_emb": w((TYPE_VOCAB, H)),
        "emb_ln_g": jnp.ones((1, H), jnp.float32),
        "emb_ln_b": jnp.zeros((1, H), jnp.float32),
        # Per-layer weights stacked on a leading layer axis; Q|K|V fused on N.
        "wqkv": w((L, H, 3 * H)),
        "bqkv": jnp.zeros((L, 1, 3 * H), jnp.float32),
        "wo": w((L, H, H)),
        "bo": jnp.zeros((L, 1, H), jnp.float32),
        "ln1_g": jnp.ones((L, 1, H), jnp.float32),
        "ln1_b": jnp.zeros((L, 1, H), jnp.float32),
        "w1": w((L, H, I)),
        "b1": jnp.zeros((L, 1, I), jnp.float32),
        "w2": w((L, I, H)),
        "b2": jnp.zeros((L, 1, H), jnp.float32),
        "ln2_g": jnp.ones((L, 1, H), jnp.float32),
        "ln2_b": jnp.zeros((L, 1, H), jnp.float32),
    }


def _full_spec(arr):
    nd = arr.ndim
    shape = arr.shape
    return pl.BlockSpec(shape, lambda b: (0,) * nd)   # weight resident across grid


# ---------------- TxtEncoder.forward ----------------
def txt_encoder_forward(params, txt, mask, segment=None):
    B, S = txt.shape
    if segment is None:
        segment = jnp.zeros_like(txt)

    # Embedding gathers: plain-JAX glue feeding the fused kernel.
    pos_ids = jnp.arange(S, dtype=jnp.int32)
    emb = (jnp.take(params["word_emb"], txt, axis=0)
           + jnp.take(params["pos_emb"], pos_ids, axis=0)[None, :, :]
           + jnp.take(params["type_emb"], segment, axis=0)).astype(jnp.float32)
    emb2d = emb.reshape(B * S, HIDDEN)

    # HF-style extended attention mask: (1 - mask) * large_negative over keys.
    mask_bias = ((1.0 - mask.astype(jnp.float32)) * NEG_INF).reshape(B, 1, S)

    # Advisory cost hint so XLA can overlap the JAX-side prologue with the kernel.
    L, H, I, NH, HD = NUM_LAYERS, HIDDEN, INTERMEDIATE, NUM_HEADS, HEAD_DIM
    flops = (2 * B * S * L * (H * 3 * H + H * H + 2 * H * I)
             + 2 * B * L * NH * 2 * S * S * HD)
    transcendentals = B * L * (NH * S * S + S * I)
    weight_keys = ("emb_ln_g", "emb_ln_b", "wqkv", "bqkv", "wo", "bo",
                   "ln1_g", "ln1_b", "w1", "b1", "w2", "b2", "ln2_g", "ln2_b")
    bytes_accessed = 4 * (int(emb2d.size) + int(mask_bias.size) + B * H
                          + sum(int(params[k].size) for k in weight_keys))

    grid_spec = pltpu.PrefetchScalarGridSpec(
        num_scalar_prefetch=0,
        grid=(B,),
        in_specs=[
            pl.BlockSpec((S, HIDDEN), lambda b: (b, 0)),       # this batch's rows
            pl.BlockSpec((1, 1, S), lambda b: (b, 0, 0)),      # this batch's key bias
            _full_spec(params["emb_ln_g"]), _full_spec(params["emb_ln_b"]),
            _full_spec(params["wqkv"]), _full_spec(params["bqkv"]),
            _full_spec(params["wo"]), _full_spec(params["bo"]),
            _full_spec(params["ln1_g"]), _full_spec(params["ln1_b"]),
            _full_spec(params["w1"]), _full_spec(params["b1"]),
            _full_spec(params["w2"]), _full_spec(params["b2"]),
            _full_spec(params["ln2_g"]), _full_spec(params["ln2_b"]),
        ],
        out_specs=pl.BlockSpec((1, 1, HIDDEN), lambda b: (b, 0, 0)),
    )

    cls3 = pl.pallas_call(
        _encoder_kernel,
        out_shape=jax.ShapeDtypeStruct((B, 1, HIDDEN), jnp.float32),
        grid_spec=grid_spec,
        compiler_params=pltpu.CompilerParams(
            dimension_semantics=("parallel",)),    # both TCs on v7x; no-op on v5e/v6e
        cost_estimate=pl.CostEstimate(flops=flops,
                                      transcendentals=transcendentals,
                                      bytes_accessed=bytes_accessed),
    )(emb2d, mask_bias,
      params["emb_ln_g"], params["emb_ln_b"],
      params["wqkv"], params["bqkv"], params["wo"], params["bo"],
      params["ln1_g"], params["ln1_b"],
      params["w1"], params["b1"], params["w2"], params["b2"],
      params["ln2_g"], params["ln2_b"])
    return cls3[:, 0, :]   # == out.last_hidden_state[:, 0, :]


if __name__ == "__main__":
    key = jax.random.PRNGKey(0)
    pkey, dkey = jax.random.split(key)
    params = init_params(pkey)

    B, S = 2, 8
    txt = jax.random.randint(dkey, (B, S), 0, VOCAB, dtype=jnp.int32)
    mask = jnp.array([[1, 1, 1, 1, 1, 1, 1, 1],
                      [1, 1, 1, 1, 1, 1, 0, 0]], dtype=jnp.int32)
    segment = jnp.zeros((B, S), dtype=jnp.int32)

    out = jax.jit(txt_encoder_forward)(params, txt, mask, segment)
    out = jax.block_until_ready(out)
    assert out.shape == (B, HIDDEN) and out.dtype == jnp.float32
    assert bool(jnp.all(jnp.isfinite(out)))
    print("KERNEL_OK")
</pallas_src>

<mosaic_0001>
module attributes {stable_mosaic.version = 11 : i64} {
  func.func @_encoder_kernel(%arg0: i32, %arg1: memref<8x32xf32, #tpu.memory_space<vmem>>, %arg2: memref<1x1x8xf32, #tpu.memory_space<vmem>>, %arg3: memref<1x32xf32, #tpu.memory_space<vmem>>, %arg4: memref<1x32xf32, #tpu.memory_space<vmem>>, %arg5: memref<2x32x96xf32, #tpu.memory_space<vmem>>, %arg6: memref<2x1x96xf32, #tpu.memory_space<vmem>>, %arg7: memref<2x32x32xf32, #tpu.memory_space<vmem>>, %arg8: memref<2x1x32xf32, #tpu.memory_space<vmem>>, %arg9: memref<2x1x32xf32, #tpu.memory_space<vmem>>, %arg10: memref<2x1x32xf32, #tpu.memory_space<vmem>>, %arg11: memref<2x32x64xf32, #tpu.memory_space<vmem>>, %arg12: memref<2x1x64xf32, #tpu.memory_space<vmem>>, %arg13: memref<2x64x32xf32, #tpu.memory_space<vmem>>, %arg14: memref<2x1x32xf32, #tpu.memory_space<vmem>>, %arg15: memref<2x1x32xf32, #tpu.memory_space<vmem>>, %arg16: memref<2x1x32xf32, #tpu.memory_space<vmem>>, %arg17: memref<1x1x32xf32, #tpu.memory_space<vmem>>) attributes {dimension_semantics = [#tpu.dimension_semantics<parallel>], iteration_bounds = array<i64: 2>, scalar_prefetch = 0 : i64, scratch_operands = 0 : i64, tpu.core_type = #tpu.core_type<tc>, window_params = [{transform_indices = @transform_0, window_bounds = array<i64: 8, 32>}, {transform_indices = @transform_1, window_bounds = array<i64: 1, 1, 8>}, {pipeline_mode = #tpu.pipeline_mode<synchronous>, transform_indices = @transform_2, window_bounds = array<i64: 1, 32>}, {pipeline_mode = #tpu.pipeline_mode<synchronous>, transform_indices = @transform_3, window_bounds = array<i64: 1, 32>}, {pipeline_mode = #tpu.pipeline_mode<synchronous>, transform_indices = @transform_4, window_bounds = array<i64: 2, 32, 96>}, {pipeline_mode = #tpu.pipeline_mode<synchronous>, transform_indices = @transform_5, window_bounds = array<i64: 2, 1, 96>}, {pipeline_mode = #tpu.pipeline_mode<synchronous>, transform_indices = @transform_6, window_bounds = array<i64: 2, 32, 32>}, {pipeline_mode = #tpu.pipeline_mode<synchronous>, transform_indices = @transform_7, window_bounds = array<i64: 2, 1, 32>}, {pipeline_mode = #tpu.pipeline_mode<synchronous>, transform_indices = @transform_8, window_bounds = array<i64: 2, 1, 32>}, {pipeline_mode = #tpu.pipeline_mode<synchronous>, transform_indices = @transform_9, window_bounds = array<i64: 2, 1, 32>}, {pipeline_mode = #tpu.pipeline_mode<synchronous>, transform_indices = @transform_10, window_bounds = array<i64: 2, 32, 64>}, {pipeline_mode = #tpu.pipeline_mode<synchronous>, transform_indices = @transform_11, window_bounds = array<i64: 2, 1, 64>}, {pipeline_mode = #tpu.pipeline_mode<synchronous>, transform_indices = @transform_12, window_bounds = array<i64: 2, 64, 32>}, {pipeline_mode = #tpu.pipeline_mode<synchronous>, transform_indices = @transform_13, window_bounds = array<i64: 2, 1, 32>}, {pipeline_mode = #tpu.pipeline_mode<synchronous>, transform_indices = @transform_14, window_bounds = array<i64: 2, 1, 32>}, {pipeline_mode = #tpu.pipeline_mode<synchronous>, transform_indices = @transform_15, window_bounds = array<i64: 2, 1, 32>}, {transform_indices = @transform_16, window_bounds = array<i64: 1, 1, 32>}]} {
    %c0 = arith.constant 0 : index
    %c0_0 = arith.constant 0 : index
    %0 = vector.load %arg1[%c0, %c0_0] : memref<8x32xf32, #tpu.memory_space<vmem>>, vector<8x32xf32>
    %c0_1 = arith.constant 0 : index
    %c0_2 = arith.constant 0 : index
    %1 = vector.load %arg3[%c0_1, %c0_2] : memref<1x32xf32, #tpu.memory_space<vmem>>, vector<1x32xf32>
    %c0_3 = arith.constant 0 : index
    %c0_4 = arith.constant 0 : index
    %2 = vector.load %arg4[%c0_3, %c0_4] : memref<1x32xf32, #tpu.memory_space<vmem>>, vector<1x32xf32>
    %cst = arith.constant dense<0.000000e+00> : vector<8xf32>
    %3 = vector.multi_reduction <add>, %0, %cst [1] : vector<8x32xf32> to vector<8xf32>
    %4 = vector.shape_cast %3 : vector<8xf32> to vector<8x1xf32>
    %cst_5 = arith.constant 3.200000e+01 : f32
    %5 = vector.broadcast %cst_5 : f32 to vector<8x1xf32>
    %6 = arith.divf %4, %5 : vector<8x1xf32>
    %7 = vector.broadcast %6 : vector<8x1xf32> to vector<8x32xf32>
    %8 = arith.subf %0, %7 : vector<8x32xf32>
    %9 = arith.mulf %8, %8 : vector<8x32xf32>
    %cst_6 = arith.constant dense<0.000000e+00> : vector<8xf32>
    %10 = vector.multi_reduction <add>, %9, %cst_6 [1] : vector<8x32xf32> to vector<8xf32>
    %11 = vector.shape_cast %10 : vector<8xf32> to vector<8x1xf32>
    %cst_7 = arith.constant 3.200000e+01 : f32
    %12 = vector.broadcast %cst_7 : f32 to vector<8x1xf32>
    %13 = arith.divf %11, %12 : vector<8x1xf32>
    %cst_8 = arith.constant 9.99999996E-13 : f32
    %14 = vector.broadcast %cst_8 : f32 to vector<8x1xf32>
    %15 = arith.addf %13, %14 : vector<8x1xf32>
    %16 = math.rsqrt %15 : vector<8x1xf32>
    %17 = vector.broadcast %16 : vector<8x1xf32> to vector<8x32xf32>
    %18 = arith.mulf %8, %17 : vector<8x32xf32>
    %19 = vector.broadcast %1 : vector<1x32xf32> to vector<8x32xf32>
    %20 = arith.mulf %18, %19 : vector<8x32xf32>
    %21 = vector.broadcast %2 : vector<1x32xf32> to vector<8x32xf32>
    %22 = arith.addf %20, %21 : vector<8x32xf32>
    %c0_9 = arith.constant 0 : index
    %c0_10 = arith.constant 0 : index
    %c0_11 = arith.constant 0 : index
    %23 = vector.load %arg2[%c0_9, %c0_10, %c0_11] : memref<1x1x8xf32, #tpu.memory_space<vmem>>, vector<1x1x8xf32>
    %c0_12 = arith.constant 0 : index
    %c0_13 = arith.constant 0 : index
    %c0_14 = arith.constant 0 : index
    %24 = vector.load %arg5[%c0_12, %c0_13, %c0_14] : memref<2x32x96xf32, #tpu.memory_space<vmem>>, vector<1x32x96xf32>
    %25 = vector.shape_cast %24 : vector<1x32x96xf32> to vector<32x96xf32>
    %cst_15 = arith.constant dense<0.000000e+00> : vector<8x96xf32>
    %26 = tpu.matmul %22, %25, %cst_15 {dimension_numbers = #tpu.dot_dimension_numbers<[1], [0], [0], [1], [0, 0, 1, 1], [], []>} : vector<8x32xf32>, vector<32x96xf32>, vector<8x96xf32> -> vector<8x96xf32>
    %c0_16 = arith.constant 0 : index
    %c0_17 = arith.constant 0 : index
    %c0_18 = arith.constant 0 : index
    %27 = vector.load %arg6[%c0_16, %c0_17, %c0_18] : memref<2x1x96xf32, #tpu.memory_space<vmem>>, vector<1x1x96xf32>
    %28 = vector.shape_cast %27 : vector<1x1x96xf32> to vector<1x96xf32>
    %29 = vector.broadcast %28 : vector<1x96xf32> to vector<8x96xf32>
    %30 = arith.addf %26, %29 : vector<8x96xf32>
    %31 = vector.extract_strided_slice %30 {offsets = [0, 0], sizes = [8, 8], strides = [1, 1]} : vector<8x96xf32> to vector<8x8xf32>
    %32 = vector.extract_strided_slice %30 {offsets = [0, 8], sizes = [8, 8], strides = [1, 1]} : vector<8x96xf32> to vector<8x8xf32>
    %33 = vector.extract_strided_slice %30 {offsets = [0, 16], sizes = [8, 8], strides = [1, 1]} : vector<8x96xf32> to vector<8x8xf32>
    %34 = vector.extract_strided_slice %30 {offsets = [0, 24], sizes = [8, 8], strides = [1, 1]} : vector<8x96xf32> to vector<8x8xf32>
    %35 = vector.shape_cast %31 : vector<8x8xf32> to vector<1x8x8xf32>
    %36 = vector.shape_cast %32 : vector<8x8xf32> to vector<1x8x8xf32>
    %37 = vector.shape_cast %33 : vector<8x8xf32> to vector<1x8x8xf32>
    %38 = vector.shape_cast %34 : vector<8x8xf32> to vector<1x8x8xf32>
    %39 = tpu.concatenate %35, %36, %37, %38 in 0 : vector<1x8x8xf32>, vector<1x8x8xf32>, vector<1x8x8xf32>, vector<1x8x8xf32> -> vector<4x8x8xf32>
    %40 = vector.extract_strided_slice %30 {offsets = [0, 32], sizes = [8, 8], strides = [1, 1]} : vector<8x96xf32> to vector<8x8xf32>
    %41 = vector.extract_strided_slice %30 {offsets = [0, 40], sizes = [8, 8], strides = [1, 1]} : vector<8x96xf32> to vector<8x8xf32>
    %42 = vector.extract_strided_slice %30 {offsets = [0, 48], sizes = [8, 8], strides = [1, 1]} : vector<8x96xf32> to vector<8x8xf32>
    %43 = vector.extract_strided_slice %30 {offsets = [0, 56], sizes = [8, 8], strides = [1, 1]} : vector<8x96xf32> to vector<8x8xf32>
    %44 = vector.shape_cast %40 : vector<8x8xf32> to vector<1x8x8xf32>
    %45 = vector.shape_cast %41 : vector<8x8xf32> to vector<1x8x8xf32>
    %46 = vector.shape_cast %42 : vector<8x8xf32> to vector<1x8x8xf32>
    %47 = vector.shape_cast %43 : vector<8x8xf32> to vector<1x8x8xf32>
    %48 = tpu.concatenate %44, %45, %46, %47 in 0 : vector<1x8x8xf32>, vector<1x8x8xf32>, vector<1x8x8xf32>, vector<1x8x8xf32> -> vector<4x8x8xf32>
    %49 = vector.extract_strided_slice %30 {offsets = [0, 64], sizes = [8, 8], strides = [1, 1]} : vector<8x96xf32> to vector<8x8xf32>
    %50 = vector.extract_strided_slice %30 {offsets = [0, 72], sizes = [8, 8], strides = [1, 1]} : vector<8x96xf32> to vector<8x8xf32>
    %51 = vector.extract_strided_slice %30 {offsets = [0, 80], sizes = [8, 8], strides = [1, 1]} : vector<8x96xf32> to vector<8x8xf32>
    %52 = vector.extract_strided_slice %30 {offsets = [0, 88], sizes = [8, 8], strides = [1, 1]} : vector<8x96xf32> to vector<8x8xf32>
    %53 = vector.shape_cast %49 : vector<8x8xf32> to vector<1x8x8xf32>
    %54 = vector.shape_cast %50 : vector<8x8xf32> to vector<1x8x8xf32>
    %55 = vector.shape_cast %51 : vector<8x8xf32> to vector<1x8x8xf32>
    %56 = vector.shape_cast %52 : vector<8x8xf32> to vector<1x8x8xf32>
    %57 = tpu.concatenate %53, %54, %55, %56 in 0 : vector<1x8x8xf32>, vector<1x8x8xf32>, vector<1x8x8xf32>, vector<1x8x8xf32> -> vector<4x8x8xf32>
    "tpu.trace_start"() <{level = 10 : i32, message = "hqd,hkd->hqk"}> : () -> ()
    %cst_19 = arith.constant dense<0.000000e+00> : vector<4x8x8xf32>
    %58 = tpu.matmul %39, %48, %cst_19 {dimension_numbers = #tpu.dot_dimension_numbers<[2], [2], [1], [1], [0, 0, 0, 1, 1, 1], [0], [0]>} : vector<4x8x8xf32>, vector<4x8x8xf32>, vector<4x8x8xf32> -> vector<4x8x8xf32>
    "tpu.trace_stop"() : () -> ()
    %cst_20 = arith.constant 0.353553385 : f32
    %59 = vector.broadcast %cst_20 : f32 to vector<4x8x8xf32>
    %60 = arith.mulf %58, %59 : vector<4x8x8xf32>
    %61 = vector.broadcast %23 : vector<1x1x8xf32> to vector<4x8x8xf32>
    %62 = arith.addf %60, %61 : vector<4x8x8xf32>
    %cst_21 = arith.constant dense<0xFF800000> : vector<4x8xf32>
    %63 = vector.multi_reduction <maximumf>, %62, %cst_21 [2] : vector<4x8x8xf32> to vector<4x8xf32>
    %64 = vector.shape_cast %63 : vector<4x8xf32> to vector<4x8x1xf32>
    %65 = vector.broadcast %64 : vector<4x8x1xf32> to vector<4x8x8xf32>
    %66 = arith.subf %62, %65 : vector<4x8x8xf32>
    %67 = math.exp %66 : vector<4x8x8xf32>
    %cst_22 = arith.constant dense<0.000000e+00> : vector<4x8xf32>
    %68 = vector.multi_reduction <add>, %67, %cst_22 [2] : vector<4x8x8xf32> to vector<4x8xf32>
    %69 = vector.shape_cast %68 : vector<4x8xf32> to vector<4x8x1xf32>
    %70 = tpu.reciprocal %69 {approx = true} : vector<4x8x1xf32> -> vector<4x8x1xf32>
    %71 = vector.broadcast %70 : vector<4x8x1xf32> to vector<4x8x8xf32>
    %72 = arith.mulf %67, %71 : vector<4x8x8xf32>
    "tpu.trace_start"() <{level = 10 : i32, message = "hqk,hkd->hqd"}> : () -> ()
    %cst_23 = arith.constant dense<0.000000e+00> : vector<4x8x8xf32>
    %73 = tpu.matmul %72, %57, %cst_23 {dimension_numbers = #tpu.dot_dimension_numbers<[2], [1], [1], [2], [0, 0, 0, 1, 1, 2], [0], [0]>} : vector<4x8x8xf32>, vector<4x8x8xf32>, vector<4x8x8xf32> -> vector<4x8x8xf32>
    "tpu.trace_stop"() : () -> ()
    %74 = vector.extract_strided_slice %73 {offsets = [0, 0, 0], sizes = [1, 8, 8], strides = [1, 1, 1]} : vector<4x8x8xf32> to vector<1x8x8xf32>
    %75 = vector.shape_cast %74 : vector<1x8x8xf32> to vector<8x8xf32>
    %76 = vector.extract_strided_slice %73 {offsets = [1, 0, 0], sizes = [1, 8, 8], strides = [1, 1, 1]} : vector<4x8x8xf32> to vector<1x8x8xf32>
    %77 = vector.shape_cast %76 : vector<1x8x8xf32> to vector<8x8xf32>
    %78 = vector.extract_strided_slice %73 {offsets = [2, 0, 0], sizes = [1, 8, 8], strides = [1, 1, 1]} : vector<4x8x8xf32> to vector<1x8x8xf32>
    %79 = vector.shape_cast %78 : vector<1x8x8xf32> to vector<8x8xf32>
    %80 = vector.extract_strided_slice %73 {offsets = [3, 0, 0], sizes = [1, 8, 8], strides = [1, 1, 1]} : vector<4x8x8xf32> to vector<1x8x8xf32>
    %81 = vector.shape_cast %80 : vector<1x8x8xf32> to vector<8x8xf32>
    %82 = tpu.concatenate %75, %77, %79, %81 in 1 : vector<8x8xf32>, vector<8x8xf32>, vector<8x8xf32>, vector<8x8xf32> -> vector<8x32xf32>
    %c0_24 = arith.constant 0 : index
    %c0_25 = arith.constant 0 : index
    %c0_26 = arith.constant 0 : index
    %83 = vector.load %arg7[%c0_24, %c0_25, %c0_26] : memref<2x32x32xf32, #tpu.memory_space<vmem>>, vector<1x32x32xf32>
    %84 = vector.shape_cast %83 : vector<1x32x32xf32> to vector<32x32xf32>
    %cst_27 = arith.constant dense<0.000000e+00> : vector<8x32xf32>
    %85 = tpu.matmul %82, %84, %cst_27 {dimension_numbers = #tpu.dot_dimension_numbers<[1], [0], [0], [1], [0, 0, 1, 1], [], []>} : vector<8x32xf32>, vector<32x32xf32>, vector<8x32xf32> -> vector<8x32xf32>
    %c0_28 = arith.constant 0 : index
    %c0_29 = arith.constant 0 : index
    %c0_30 = arith.constant 0 : index
    %86 = vector.load %arg8[%c0_28, %c0_29, %c0_30] : memref<2x1x32xf32, #tpu.memory_space<vmem>>, vector<1x1x32xf32>
    %87 = vector.shape_cast %86 : vector<1x1x32xf32> to vector<1x32xf32>
    %88 = vector.broadcast %87 : vector<1x32xf32> to vector<8x32xf32>
    %89 = arith.addf %85, %88 : vector<8x32xf32>
    %90 = arith.addf %89, %22 : vector<8x32xf32>
    %c0_31 = arith.constant 0 : index
    %c0_32 = arith.constant 0 : index
    %c0_33 = arith.constant 0 : index
    %91 = vector.load %arg9[%c0_31, %c0_32, %c0_33] : memref<2x1x32xf32, #tpu.memory_space<vmem>>, vector<1x1x32xf32>
    %92 = vector.shape_cast %91 : vector<1x1x32xf32> to vector<1x32xf32>
    %c0_34 = arith.constant 0 : index
    %c0_35 = arith.constant 0 : index
    %c0_36 = arith.constant 0 : index
    %93 = vector.load %arg10[%c0_34, %c0_35, %c0_36] : memref<2x1x32xf32, #tpu.memory_space<vmem>>, vector<1x1x32xf32>
    %94 = vector.shape_cast %93 : vector<1x1x32xf32> to vector<1x32xf32>
    %cst_37 = arith.constant dense<0.000000e+00> : vector<8xf32>
    %95 = vector.multi_reduction <add>, %90, %cst_37 [1] : vector<8x32xf32> to vector<8xf32>
    %96 = vector.shape_cast %95 : vector<8xf32> to vector<8x1xf32>
    %cst_38 = arith.constant 3.200000e+01 : f32
    %97 = vector.broadcast %cst_38 : f32 to vector<8x1xf32>
    %98 = arith.divf %96, %97 : vector<8x1xf32>
    %99 = vector.broadcast %98 : vector<8x1xf32> to vector<8x32xf32>
    %100 = arith.subf %90, %99 : vector<8x32xf32>
    %101 = arith.mulf %100, %100 : vector<8x32xf32>
    %cst_39 = arith.constant dense<0.000000e+00> : vector<8xf32>
    %102 = vector.multi_reduction <add>, %101, %cst_39 [1] : vector<8x32xf32> to vector<8xf32>
    %103 = vector.shape_cast %102 : vector<8xf32> to vector<8x1xf32>
    %cst_40 = arith.constant 3.200000e+01 : f32
    %104 = vector.broadcast %cst_40 : f32 to vector<8x1xf32>
    %105 = arith.divf %103, %104 : vector<8x1xf32>
    %cst_41 = arith.constant 9.99999996E-13 : f32
    %106 = vector.broadcast %cst_41 : f32 to vector<8x1xf32>
    %107 = arith.addf %105, %106 : vector<8x1xf32>
    %108 = math.rsqrt %107 : vector<8x1xf32>
    %109 = vector.broadcast %108 : vector<8x1xf32> to vector<8x32xf32>
    %110 = arith.mulf %100, %109 : vector<8x32xf32>
    %111 = vector.broadcast %92 : vector<1x32xf32> to vector<8x32xf32>
    %112 = arith.mulf %110, %111 : vector<8x32xf32>
    %113 = vector.broadcast %94 : vector<1x32xf32> to vector<8x32xf32>
    %114 = arith.addf %112, %113 : vector<8x32xf32>
    %c0_42 = arith.constant 0 : index
    %c0_43 = arith.constant 0 : index
    %c0_44 = arith.constant 0 : index
    %115 = vector.load %arg11[%c0_42, %c0_43, %c0_44] : memref<2x32x64xf32, #tpu.memory_space<vmem>>, vector<1x32x64xf32>
    %116 = vector.shape_cast %115 : vector<1x32x64xf32> to vector<32x64xf32>
    %cst_45 = arith.constant dense<0.000000e+00> : vector<8x64xf32>
    %117 = tpu.matmul %114, %116, %cst_45 {dimension_numbers = #tpu.dot_dimension_numbers<[1], [0], [0], [1], [0, 0, 1, 1], [], []>} : vector<8x32xf32>, vector<32x64xf32>, vector<8x64xf32> -> vector<8x64xf32>
    %c0_46 = arith.constant 0 : index
    %c0_47 = arith.constant 0 : index
    %c0_48 = arith.constant 0 : index
    %118 = vector.load %arg12[%c0_46, %c0_47, %c0_48] : memref<2x1x64xf32, #tpu.memory_space<vmem>>, vector<1x1x64xf32>
    %119 = vector.shape_cast %118 : vector<1x1x64xf32> to vector<1x64xf32>
    %120 = vector.broadcast %119 : vector<1x64xf32> to vector<8x64xf32>
    %121 = arith.addf %117, %120 : vector<8x64xf32>
    %cst_49 = arith.constant 5.000000e-01 : f32
    %122 = vector.broadcast %cst_49 : f32 to vector<8x64xf32>
    %123 = arith.mulf %122, %121 : vector<8x64xf32>
    %cst_50 = arith.constant 0.707106769 : f32
    %124 = vector.broadcast %cst_50 : f32 to vector<8x64xf32>
    %125 = arith.mulf %121, %124 : vector<8x64xf32>
    %cst_51 = arith.constant -4.000000e+00 : f32
    %cst_52 = arith.constant 4.000000e+00 : f32
    %126 = vector.broadcast %cst_51 : f32 to vector<8x64xf32>
    %127 = arith.maximumf %126, %125 : vector<8x64xf32>
    %128 = vector.broadcast %cst_52 : f32 to vector<8x64xf32>
    %129 = arith.minimumf %128, %127 : vector<8x64xf32>
    %130 = arith.mulf %129, %129 : vector<8x64xf32>
    %cst_53 = arith.constant -2.72614237E-10 : f32
    %131 = vector.broadcast %cst_53 : f32 to vector<8x64xf32>
    %132 = arith.mulf %130, %131 : vector<8x64xf32>
    %cst_54 = arith.constant 2.77068146E-8 : f32
    %133 = vector.broadcast %cst_54 : f32 to vector<8x64xf32>
    %134 = arith.addf %132, %133 : vector<8x64xf32>
    %135 = arith.mulf %130, %134 : vector<8x64xf32>
    %cst_55 = arith.constant -2.10102394E-6 : f32
    %136 = vector.broadcast %cst_55 : f32 to vector<8x64xf32>
    %137 = arith.addf %135, %136 : vector<8x64xf32>
    %138 = arith.mulf %130, %137 : vector<8x64xf32>
    %cst_56 = arith.constant -5.69250624E-5 : f32
    %139 = vector.broadcast %cst_56 : f32 to vector<8x64xf32>
    %140 = arith.addf %138, %139 : vector<8x64xf32>
    %141 = arith.mulf %130, %140 : vector<8x64xf32>
    %cst_57 = arith.constant -7.34990637E-4 : f32
    %142 = vector.broadcast %cst_57 : f32 to vector<8x64xf32>
    %143 = arith.addf %141, %142 : vector<8x64xf32>
    %144 = arith.mulf %130, %143 : vector<8x64xf32>
    %cst_58 = arith.constant -2.954600e-03 : f32
    %145 = vector.broadcast %cst_58 : f32 to vector<8x64xf32>
    %146 = arith.addf %144, %145 : vector<8x64xf32>
    %147 = arith.mulf %130, %146 : vector<8x64xf32>
    %cst_59 = arith.constant -0.0160960332 : f32
    %148 = vector.broadcast %cst_59 : f32 to vector<8x64xf32>
    %149 = arith.addf %147, %148 : vector<8x64xf32>
    %150 = arith.mulf %129, %149 : vector<8x64xf32>
    %cst_60 = arith.constant -1.45660715E-5 : f32
    %151 = vector.broadcast %cst_60 : f32 to vector<8x64xf32>
    %152 = arith.mulf %130, %151 : vector<8x64xf32>
    %cst_61 = arith.constant -2.13374049E-4 : f32
    %153 = vector.broadcast %cst_61 : f32 to vector<8x64xf32>
    %154 = arith.addf %152, %153 : vector<8x64xf32>
    %155 = arith.mulf %130, %154 : vector<8x64xf32>
    %cst_62 = arith.constant -0.00168282702 : f32
    %156 = vector.broadcast %cst_62 : f32 to vector<8x64xf32>
    %157 = arith.addf %155, %156 : vector<8x64xf32>
    %158 = arith.mulf %130, %157 : vector<8x64xf32>
    %cst_63 = arith.constant -0.00737332925 : f32
    %159 = vector.broadcast %cst_63 : f32 to vector<8x64xf32>
    %160 = arith.addf %158, %159 : vector<8x64xf32>
    %161 = arith.mulf %130, %160 : vector<8x64xf32>
    %cst_64 = arith.constant -0.0142647391 : f32
    %162 = vector.broadcast %cst_64 : f32 to vector<8x64xf32>
    %163 = arith.addf %161, %162 : vector<8x64xf32>
    %164 = tpu.reciprocal %163 {approx = true} : vector<8x64xf32> -> vector<8x64xf32>
    %165 = arith.mulf %150, %164 : vector<8x64xf32>
    %cst_65 = arith.constant 1.000000e+00 : f32
    %166 = vector.broadcast %cst_65 : f32 to vector<8x64xf32>
    %167 = arith.addf %166, %165 : vector<8x64xf32>
    %168 = arith.mulf %123, %167 : vector<8x64xf32>
    %c0_66 = arith.constant 0 : index
    %c0_67 = arith.constant 0 : index
    %c0_68 = arith.constant 0 : index
    %169 = vector.load %arg13[%c0_66, %c0_67, %c0_68] : memref<2x64x32xf32, #tpu.memory_space<vmem>>, vector<1x64x32xf32>
    %170 = vector.shape_cast %169 : vector<1x64x32xf32> to vector<64x32xf32>
    %cst_69 = arith.constant dense<0.000000e+00> : vector<8x32xf32>
    %171 = tpu.matmul %168, %170, %cst_69 {dimension_numbers = #tpu.dot_dimension_numbers<[1], [0], [0], [1], [0, 0, 1, 1], [], []>} : vector<8x64xf32>, vector<64x32xf32>, vector<8x32xf32> -> vector<8x32xf32>
    %c0_70 = arith.constant 0 : index
    %c0_71 = arith.constant 0 : index
    %c0_72 = arith.constant 0 : index
    %172 = vector.load %arg14[%c0_70, %c0_71, %c0_72] : memref<2x1x32xf32, #tpu.memory_space<vmem>>, vector<1x1x32xf32>
    %173 = vector.shape_cast %172 : vector<1x1x32xf32> to vector<1x32xf32>
    %174 = vector.broadcast %173 : vector<1x32xf32> to vector<8x32xf32>
    %175 = arith.addf %171, %174 : vector<8x32xf32>
    %176 = arith.addf %175, %114 : vector<8x32xf32>
    %c0_73 = arith.constant 0 : index
    %c0_74 = arith.constant 0 : index
    %c0_75 = arith.constant 0 : index
    %177 = vector.load %arg15[%c0_73, %c0_74, %c0_75] : memref<2x1x32xf32, #tpu.memory_space<vmem>>, vector<1x1x32xf32>
    %178 = vector.shape_cast %177 : vector<1x1x32xf32> to vector<1x32xf32>
    %c0_76 = arith.constant 0 : index
    %c0_77 = arith.constant 0 : index
    %c0_78 = arith.constant 0 : index
    %179 = vector.load %arg16[%c0_76, %c0_77, %c0_78] : memref<2x1x32xf32, #tpu.memory_space<vmem>>, vector<1x1x32xf32>
    %180 = vector.shape_cast %179 : vector<1x1x32xf32> to vector<1x32xf32>
    %cst_79 = arith.constant dense<0.000000e+00> : vector<8xf32>
    %181 = vector.multi_reduction <add>, %176, %cst_79 [1] : vector<8x32xf32> to vector<8xf32>
    %182 = vector.shape_cast %181 : vector<8xf32> to vector<8x1xf32>
    %cst_80 = arith.constant 3.200000e+01 : f32
    %183 = vector.broadcast %cst_80 : f32 to vector<8x1xf32>
    %184 = arith.divf %182, %183 : vector<8x1xf32>
    %185 = vector.broadcast %184 : vector<8x1xf32> to vector<8x32xf32>
    %186 = arith.subf %176, %185 : vector<8x32xf32>
    %187 = arith.mulf %186, %186 : vector<8x32xf32>
    %cst_81 = arith.constant dense<0.000000e+00> : vector<8xf32>
    %188 = vector.multi_reduction <add>, %187, %cst_81 [1] : vector<8x32xf32> to vector<8xf32>
    %189 = vector.shape_cast %188 : vector<8xf32> to vector<8x1xf32>
    %cst_82 = arith.constant 3.200000e+01 : f32
    %190 = vector.broadcast %cst_82 : f32 to vector<8x1xf32>
    %191 = arith.divf %189, %190 : vector<8x1xf32>
    %cst_83 = arith.constant 9.99999996E-13 : f32
    %192 = vector.broadcast %cst_83 : f32 to vector<8x1xf32>
    %193 = arith.addf %191, %192 : vector<8x1xf32>
    %194 = math.rsqrt %193 : vector<8x1xf32>
    %195 = vector.broadcast %194 : vector<8x1xf32> to vector<8x32xf32>
    %196 = arith.mulf %186, %195 : vector<8x32xf32>
    %197 = vector.broadcast %178 : vector<1x32xf32> to vector<8x32xf32>
    %198 = arith.mulf %196, %197 : vector<8x32xf32>
    %199 = vector.broadcast %180 : vector<1x32xf32> to vector<8x32xf32>
    %200 = arith.addf %198, %199 : vector<8x32xf32>
    %c1 = arith.constant 1 : index
    %c0_84 = arith.constant 0 : index
    %c0_85 = arith.constant 0 : index
    %201 = vector.load %arg5[%c1, %c0_84, %c0_85] : memref<2x32x96xf32, #tpu.memory_space<vmem>>, vector<1x32x96xf32>
    %202 = vector.shape_cast %201 : vector<1x32x96xf32> to vector<32x96xf32>
    %cst_86 = arith.constant dense<0.000000e+00> : vector<8x96xf32>
    %203 = tpu.matmul %200, %202, %cst_86 {dimension_numbers = #tpu.dot_dimension_numbers<[1], [0], [0], [1], [0, 0, 1, 1], [], []>} : vector<8x32xf32>, vector<32x96xf32>, vector<8x96xf32> -> vector<8x96xf32>
    %c1_87 = arith.constant 1 : index
    %c0_88 = arith.constant 0 : index
    %c0_89 = arith.constant 0 : index
    %204 = vector.load %arg6[%c1_87, %c0_88, %c0_89] : memref<2x1x96xf32, #tpu.memory_space<vmem>>, vector<1x1x96xf32>
    %205 = vector.shape_cast %204 : vector<1x1x96xf32> to vector<1x96xf32>
    %206 = vector.broadcast %205 : vector<1x96xf32> to vector<8x96xf32>
    %207 = arith.addf %203, %206 : vector<8x96xf32>
    %208 = vector.extract_strided_slice %207 {offsets = [0, 0], sizes = [8, 8], strides = [1, 1]} : vector<8x96xf32> to vector<8x8xf32>
    %209 = vector.extract_strided_slice %207 {offsets = [0, 8], sizes = [8, 8], strides = [1, 1]} : vector<8x96xf32> to vector<8x8xf32>
    %210 = vector.extract_strided_slice %207 {offsets = [0, 16], sizes = [8, 8], strides = [1, 1]} : vector<8x96xf32> to vector<8x8xf32>
    %211 = vector.extract_strided_slice %207 {offsets = [0, 24], sizes = [8, 8], strides = [1, 1]} : vector<8x96xf32> to vector<8x8xf32>
    %212 = vector.shape_cast %208 : vector<8x8xf32> to vector<1x8x8xf32>
    %213 = vector.shape_cast %209 : vector<8x8xf32> to vector<1x8x8xf32>
    %214 = vector.shape_cast %210 : vector<8x8xf32> to vector<1x8x8xf32>
    %215 = vector.shape_cast %211 : vector<8x8xf32> to vector<1x8x8xf32>
    %216 = tpu.concatenate %212, %213, %214, %215 in 0 : vector<1x8x8xf32>, vector<1x8x8xf32>, vector<1x8x8xf32>, vector<1x8x8xf32> -> vector<4x8x8xf32>
    %217 = vector.extract_strided_slice %207 {offsets = [0, 32], sizes = [8, 8], strides = [1, 1]} : vector<8x96xf32> to vector<8x8xf32>
    %218 = vector.extract_strided_slice %207 {offsets = [0, 40], sizes = [8, 8], strides = [1, 1]} : vector<8x96xf32> to vector<8x8xf32>
    %219 = vector.extract_strided_slice %207 {offsets = [0, 48], sizes = [8, 8], strides = [1, 1]} : vector<8x96xf32> to vector<8x8xf32>
    %220 = vector.extract_strided_slice %207 {offsets = [0, 56], sizes = [8, 8], strides = [1, 1]} : vector<8x96xf32> to vector<8x8xf32>
    %221 = vector.shape_cast %217 : vector<8x8xf32> to vector<1x8x8xf32>
    %222 = vector.shape_cast %218 : vector<8x8xf32> to vector<1x8x8xf32>
    %223 = vector.shape_cast %219 : vector<8x8xf32> to vector<1x8x8xf32>
    %224 = vector.shape_cast %220 : vector<8x8xf32> to vector<1x8x8xf32>
    %225 = tpu.concatenate %221, %222, %223, %224 in 0 : vector<1x8x8xf32>, vector<1x8x8xf32>, vector<1x8x8xf32>, vector<1x8x8xf32> -> vector<4x8x8xf32>
    %226 = vector.extract_strided_slice %207 {offsets = [0, 64], sizes = [8, 8], strides = [1, 1]} : vector<8x96xf32> to vector<8x8xf32>
    %227 = vector.extract_strided_slice %207 {offsets = [0, 72], sizes = [8, 8], strides = [1, 1]} : vector<8x96xf32> to vector<8x8xf32>
    %228 = vector.extract_strided_slice %207 {offsets = [0, 80], sizes = [8, 8], strides = [1, 1]} : vector<8x96xf32> to vector<8x8xf32>
    %229 = vector.extract_strided_slice %207 {offsets = [0, 88], sizes = [8, 8], strides = [1, 1]} : vector<8x96xf32> to vector<8x8xf32>
    %230 = vector.shape_cast %226 : vector<8x8xf32> to vector<1x8x8xf32>
    %231 = vector.shape_cast %227 : vector<8x8xf32> to vector<1x8x8xf32>
    %232 = vector.shape_cast %228 : vector<8x8xf32> to vector<1x8x8xf32>
    %233 = vector.shape_cast %229 : vector<8x8xf32> to vector<1x8x8xf32>
    %234 = tpu.concatenate %230, %231, %232, %233 in 0 : vector<1x8x8xf32>, vector<1x8x8xf32>, vector<1x8x8xf32>, vector<1x8x8xf32> -> vector<4x8x8xf32>
    "tpu.trace_start"() <{level = 10 : i32, message = "hqd,hkd->hqk"}> : () -> ()
    %cst_90 = arith.constant dense<0.000000e+00> : vector<4x8x8xf32>
    %235 = tpu.matmul %216, %225, %cst_90 {dimension_numbers = #tpu.dot_dimension_numbers<[2], [2], [1], [1], [0, 0, 0, 1, 1, 1], [0], [0]>} : vector<4x8x8xf32>, vector<4x8x8xf32>, vector<4x8x8xf32> -> vector<4x8x8xf32>
    "tpu.trace_stop"() : () -> ()
    %cst_91 = arith.constant 0.353553385 : f32
    %236 = vector.broadcast %cst_91 : f32 to vector<4x8x8xf32>
    %237 = arith.mulf %235, %236 : vector<4x8x8xf32>
    %238 = vector.broadcast %23 : vector<1x1x8xf32> to vector<4x8x8xf32>
    %239 = arith.addf %237, %238 : vector<4x8x8xf32>
    %cst_92 = arith.constant dense<0xFF800000> : vector<4x8xf32>
    %240 = vector.multi_reduction <maximumf>, %239, %cst_92 [2] : vector<4x8x8xf32> to vector<4x8xf32>
    %241 = vector.shape_cast %240 : vector<4x8xf32> to vector<4x8x1xf32>
    %242 = vector.broadcast %241 : vector<4x8x1xf32> to vector<4x8x8xf32>
    %243 = arith.subf %239, %242 : vector<4x8x8xf32>
    %244 = math.exp %243 : vector<4x8x8xf32>
    %cst_93 = arith.constant dense<0.000000e+00> : vector<4x8xf32>
    %245 = vector.multi_reduction <add>, %244, %cst_93 [2] : vector<4x8x8xf32> to vector<4x8xf32>
    %246 = vector.shape_cast %245 : vector<4x8xf32> to vector<4x8x1xf32>
    %247 = tpu.reciprocal %246 {approx = true} : vector<4x8x1xf32> -> vector<4x8x1xf32>
    %248 = vector.broadcast %247 : vector<4x8x1xf32> to vector<4x8x8xf32>
    %249 = arith.mulf %244, %248 : vector<4x8x8xf32>
    "tpu.trace_start"() <{level = 10 : i32, message = "hqk,hkd->hqd"}> : () -> ()
    %cst_94 = arith.constant dense<0.000000e+00> : vector<4x8x8xf32>
    %250 = tpu.matmul %249, %234, %cst_94 {dimension_numbers = #tpu.dot_dimension_numbers<[2], [1], [1], [2], [0, 0, 0, 1, 1, 2], [0], [0]>} : vector<4x8x8xf32>, vector<4x8x8xf32>, vector<4x8x8xf32> -> vector<4x8x8xf32>
    "tpu.trace_stop"() : () -> ()
    %251 = vector.extract_strided_slice %250 {offsets = [0, 0, 0], sizes = [1, 8, 8], strides = [1, 1, 1]} : vector<4x8x8xf32> to vector<1x8x8xf32>
    %252 = vector.shape_cast %251 : vector<1x8x8xf32> to vector<8x8xf32>
    %253 = vector.extract_strided_slice %250 {offsets = [1, 0, 0], sizes = [1, 8, 8], strides = [1, 1, 1]} : vector<4x8x8xf32> to vector<1x8x8xf32>
    %254 = vector.shape_cast %253 : vector<1x8x8xf32> to vector<8x8xf32>
    %255 = vector.extract_strided_slice %250 {offsets = [2, 0, 0], sizes = [1, 8, 8], strides = [1, 1, 1]} : vector<4x8x8xf32> to vector<1x8x8xf32>
    %256 = vector.shape_cast %255 : vector<1x8x8xf32> to vector<8x8xf32>
    %257 = vector.extract_strided_slice %250 {offsets = [3, 0, 0], sizes = [1, 8, 8], strides = [1, 1, 1]} : vector<4x8x8xf32> to vector<1x8x8xf32>
    %258 = vector.shape_cast %257 : vector<1x8x8xf32> to vector<8x8xf32>
    %259 = tpu.concatenate %252, %254, %256, %258 in 1 : vector<8x8xf32>, vector<8x8xf32>, vector<8x8xf32>, vector<8x8xf32> -> vector<8x32xf32>
    %c1_95 = arith.constant 1 : index
    %c0_96 = arith.constant 0 : index
    %c0_97 = arith.constant 0 : index
    %260 = vector.load %arg7[%c1_95, %c0_96, %c0_97] : memref<2x32x32xf32, #tpu.memory_space<vmem>>, vector<1x32x32xf32>
    %261 = vector.shape_cast %260 : vector<1x32x32xf32> to vector<32x32xf32>
    %cst_98 = arith.constant dense<0.000000e+00> : vector<8x32xf32>
    %262 = tpu.matmul %259, %261, %cst_98 {dimension_numbers = #tpu.dot_dimension_numbers<[1], [0], [0], [1], [0, 0, 1, 1], [], []>} : vector<8x32xf32>, vector<32x32xf32>, vector<8x32xf32> -> vector<8x32xf32>
    %c1_99 = arith.constant 1 : index
    %c0_100 = arith.constant 0 : index
    %c0_101 = arith.constant 0 : index
    %263 = vector.load %arg8[%c1_99, %c0_100, %c0_101] : memref<2x1x32xf32, #tpu.memory_space<vmem>>, vector<1x1x32xf32>
    %264 = vector.shape_cast %263 : vector<1x1x32xf32> to vector<1x32xf32>
    %265 = vector.broadcast %264 : vector<1x32xf32> to vector<8x32xf32>
    %266 = arith.addf %262, %265 : vector<8x32xf32>
    %267 = arith.addf %266, %200 : vector<8x32xf32>
    %c1_102 = arith.constant 1 : index
    %c0_103 = arith.constant 0 : index
    %c0_104 = arith.constant 0 : index
    %268 = vector.load %arg9[%c1_102, %c0_103, %c0_104] : memref<2x1x32xf32, #tpu.memory_space<vmem>>, vector<1x1x32xf32>
    %269 = vector.shape_cast %268 : vector<1x1x32xf32> to vector<1x32xf32>
    %c1_105 = arith.constant 1 : index
    %c0_106 = arith.constant 0 : index
    %c0_107 = arith.constant 0 : index
    %270 = vector.load %arg10[%c1_105, %c0_106, %c0_107] : memref<2x1x32xf32, #tpu.memory_space<vmem>>, vector<1x1x32xf32>
    %271 = vector.shape_cast %270 : vector<1x1x32xf32> to vector<1x32xf32>
    %cst_108 = arith.constant dense<0.000000e+00> : vector<8xf32>
    %272 = vector.multi_reduction <add>, %267, %cst_108 [1] : vector<8x32xf32> to vector<8xf32>
    %273 = vector.shape_cast %272 : vector<8xf32> to vector<8x1xf32>
    %cst_109 = arith.constant 3.200000e+01 : f32
    %274 = vector.broadcast %cst_109 : f32 to vector<8x1xf32>
    %275 = arith.divf %273, %274 : vector<8x1xf32>
    %276 = vector.broadcast %275 : vector<8x1xf32> to vector<8x32xf32>
    %277 = arith.subf %267, %276 : vector<8x32xf32>
    %278 = arith.mulf %277, %277 : vector<8x32xf32>
    %cst_110 = arith.constant dense<0.000000e+00> : vector<8xf32>
    %279 = vector.multi_reduction <add>, %278, %cst_110 [1] : vector<8x32xf32> to vector<8xf32>
    %280 = vector.shape_cast %279 : vector<8xf32> to vector<8x1xf32>
    %cst_111 = arith.constant 3.200000e+01 : f32
    %281 = vector.broadcast %cst_111 : f32 to vector<8x1xf32>
    %282 = arith.divf %280, %281 : vector<8x1xf32>
    %cst_112 = arith.constant 9.99999996E-13 : f32
    %283 = vector.broadcast %cst_112 : f32 to vector<8x1xf32>
    %284 = arith.addf %282, %283 : vector<8x1xf32>
    %285 = math.rsqrt %284 : vector<8x1xf32>
    %286 = vector.broadcast %285 : vector<8x1xf32> to vector<8x32xf32>
    %287 = arith.mulf %277, %286 : vector<8x32xf32>
    %288 = vector.broadcast %269 : vector<1x32xf32> to vector<8x32xf32>
    %289 = arith.mulf %287, %288 : vector<8x32xf32>
    %290 = vector.broadcast %271 : vector<1x32xf32> to vector<8x32xf32>
    %291 = arith.addf %289, %290 : vector<8x32xf32>
    %c1_113 = arith.constant 1 : index
    %c0_114 = arith.constant 0 : index
    %c0_115 = arith.constant 0 : index
    %292 = vector.load %arg11[%c1_113, %c0_114, %c0_115] : memref<2x32x64xf32, #tpu.memory_space<vmem>>, vector<1x32x64xf32>
    %293 = vector.shape_cast %292 : vector<1x32x64xf32> to vector<32x64xf32>
    %cst_116 = arith.constant dense<0.000000e+00> : vector<8x64xf32>
    %294 = tpu.matmul %291, %293, %cst_116 {dimension_numbers = #tpu.dot_dimension_numbers<[1], [0], [0], [1], [0, 0, 1, 1], [], []>} : vector<8x32xf32>, vector<32x64xf32>, vector<8x64xf32> -> vector<8x64xf32>
    %c1_117 = arith.constant 1 : index
    %c0_118 = arith.constant 0 : index
    %c0_119 = arith.constant 0 : index
    %295 = vector.load %arg12[%c1_117, %c0_118, %c0_119] : memref<2x1x64xf32, #tpu.memory_space<vmem>>, vector<1x1x64xf32>
    %296 = vector.shape_cast %295 : vector<1x1x64xf32> to vector<1x64xf32>
    %297 = vector.broadcast %296 : vector<1x64xf32> to vector<8x64xf32>
    %298 = arith.addf %294, %297 : vector<8x64xf32>
    %cst_120 = arith.constant 5.000000e-01 : f32
    %299 = vector.broadcast %cst_120 : f32 to vector<8x64xf32>
    %300 = arith.mulf %299, %298 : vector<8x64xf32>
    %cst_121 = arith.constant 0.707106769 : f32
    %301 = vector.broadcast %cst_121 : f32 to vector<8x64xf32>
    %302 = arith.mulf %298, %301 : vector<8x64xf32>
    %cst_122 = arith.constant -4.000000e+00 : f32
    %cst_123 = arith.constant 4.000000e+00 : f32
    %303 = vector.broadcast %cst_122 : f32 to vector<8x64xf32>
    %304 = arith.maximumf %303, %302 : vector<8x64xf32>
    %305 = vector.broadcast %cst_123 : f32 to vector<8x64xf32>
    %306 = arith.minimumf %305, %304 : vector<8x64xf32>
    %307 = arith.mulf %306, %306 : vector<8x64xf32>
    %cst_124 = arith.constant -2.72614237E-10 : f32
    %308 = vector.broadcast %cst_124 : f32 to vector<8x64xf32>
    %309 = arith.mulf %307, %308 : vector<8x64xf32>
    %cst_125 = arith.constant 2.77068146E-8 : f32
    %310 = vector.broadcast %cst_125 : f32 to vector<8x64xf32>
    %311 = arith.addf %309, %310 : vector<8x64xf32>
    %312 = arith.mulf %307, %311 : vector<8x64xf32>
    %cst_126 = arith.constant -2.10102394E-6 : f32
    %313 = vector.broadcast %cst_126 : f32 to vector<8x64xf32>
    %314 = arith.addf %312, %313 : vector<8x64xf32>
    %315 = arith.mulf %307, %314 : vector<8x64xf32>
    %cst_127 = arith.constant -5.69250624E-5 : f32
    %316 = vector.broadcast %cst_127 : f32 to vector<8x64xf32>
    %317 = arith.addf %315, %316 : vector<8x64xf32>
    %318 = arith.mulf %307, %317 : vector<8x64xf32>
    %cst_128 = arith.constant -7.34990637E-4 : f32
    %319 = vector.broadcast %cst_128 : f32 to vector<8x64xf32>
    %320 = arith.addf %318, %319 : vector<8x64xf32>
    %321 = arith.mulf %307, %320 : vector<8x64xf32>
    %cst_129 = arith.constant -2.954600e-03 : f32
    %322 = vector.broadcast %cst_129 : f32 to vector<8x64xf32>
    %323 = arith.addf %321, %322 : vector<8x64xf32>
    %324 = arith.mulf %307, %323 : vector<8x64xf32>
    %cst_130 = arith.constant -0.0160960332 : f32
    %325 = vector.broadcast %cst_130 : f32 to vector<8x64xf32>
    %326 = arith.addf %324, %325 : vector<8x64xf32>
    %327 = arith.mulf %306, %326 : vector<8x64xf32>
    %cst_131 = arith.constant -1.45660715E-5 : f32
    %328 = vector.broadcast %cst_131 : f32 to vector<8x64xf32>
    %329 = arith.mulf %307, %328 : vector<8x64xf32>
    %cst_132 = arith.constant -2.13374049E-4 : f32
    %330 = vector.broadcast %cst_132 : f32 to vector<8x64xf32>
    %331 = arith.addf %329, %330 : vector<8x64xf32>
    %332 = arith.mulf %307, %331 : vector<8x64xf32>
    %cst_133 = arith.constant -0.00168282702 : f32
    %333 = vector.broadcast %cst_133 : f32 to vector<8x64xf32>
    %334 = arith.addf %332, %333 : vector<8x64xf32>
    %335 = arith.mulf %307, %334 : vector<8x64xf32>
    %cst_134 = arith.constant -0.00737332925 : f32
    %336 = vector.broadcast %cst_134 : f32 to vector<8x64xf32>
    %337 = arith.addf %335, %336 : vector<8x64xf32>
    %338 = arith.mulf %307, %337 : vector<8x64xf32>
    %cst_135 = arith.constant -0.0142647391 : f32
    %339 = vector.broadcast %cst_135 : f32 to vector<8x64xf32>
    %340 = arith.addf %338, %339 : vector<8x64xf32>
    %341 = tpu.reciprocal %340 {approx = true} : vector<8x64xf32> -> vector<8x64xf32>
    %342 = arith.mulf %327, %341 : vector<8x64xf32>
    %cst_136 = arith.constant 1.000000e+00 : f32
    %343 = vector.broadcast %cst_136 : f32 to vector<8x64xf32>
    %344 = arith.addf %343, %342 : vector<8x64xf32>
    %345 = arith.mulf %300, %344 : vector<8x64xf32>
    %c1_137 = arith.constant 1 : index
    %c0_138 = arith.constant 0 : index
    %c0_139 = arith.constant 0 : index
    %346 = vector.load %arg13[%c1_137, %c0_138, %c0_139] : memref<2x64x32xf32, #tpu.memory_space<vmem>>, vector<1x64x32xf32>
    %347 = vector.shape_cast %346 : vector<1x64x32xf32> to vector<64x32xf32>
    %cst_140 = arith.constant dense<0.000000e+00> : vector<8x32xf32>
    %348 = tpu.matmul %345, %347, %cst_140 {dimension_numbers = #tpu.dot_dimension_numbers<[1], [0], [0], [1], [0, 0, 1, 1], [], []>} : vector<8x64xf32>, vector<64x32xf32>, vector<8x32xf32> -> vector<8x32xf32>
    %c1_141 = arith.constant 1 : index
    %c0_142 = arith.constant 0 : index
    %c0_143 = arith.constant 0 : index
    %349 = vector.load %arg14[%c1_141, %c0_142, %c0_143] : memref<2x1x32xf32, #tpu.memory_space<vmem>>, vector<1x1x32xf32>
    %350 = vector.shape_cast %349 : vector<1x1x32xf32> to vector<1x32xf32>
    %351 = vector.broadcast %350 : vector<1x32xf32> to vector<8x32xf32>
    %352 = arith.addf %348, %351 : vector<8x32xf32>
    %353 = arith.addf %352, %291 : vector<8x32xf32>
    %c1_144 = arith.constant 1 : index
    %c0_145 = arith.constant 0 : index
    %c0_146 = arith.constant 0 : index
    %354 = vector.load %arg15[%c1_144, %c0_145, %c0_146] : memref<2x1x32xf32, #tpu.memory_space<vmem>>, vector<1x1x32xf32>
    %355 = vector.shape_cast %354 : vector<1x1x32xf32> to vector<1x32xf32>
    %c1_147 = arith.constant 1 : index
    %c0_148 = arith.constant 0 : index
    %c0_149 = arith.constant 0 : index
    %356 = vector.load %arg16[%c1_147, %c0_148, %c0_149] : memref<2x1x32xf32, #tpu.memory_space<vmem>>, vector<1x1x32xf32>
    %357 = vector.shape_cast %356 : vector<1x1x32xf32> to vector<1x32xf32>
    %cst_150 = arith.constant dense<0.000000e+00> : vector<8xf32>
    %358 = vector.multi_reduction <add>, %353, %cst_150 [1] : vector<8x32xf32> to vector<8xf32>
    %359 = vector.shape_cast %358 : vector<8xf32> to vector<8x1xf32>
    %cst_151 = arith.constant 3.200000e+01 : f32
    %360 = vector.broadcast %cst_151 : f32 to vector<8x1xf32>
    %361 = arith.divf %359, %360 : vector<8x1xf32>
    %362 = vector.broadcast %361 : vector<8x1xf32> to vector<8x32xf32>
    %363 = arith.subf %353, %362 : vector<8x32xf32>
    %364 = arith.mulf %363, %363 : vector<8x32xf32>
    %cst_152 = arith.constant dense<0.000000e+00> : vector<8xf32>
    %365 = vector.multi_reduction <add>, %364, %cst_152 [1] : vector<8x32xf32> to vector<8xf32>
    %366 = vector.shape_cast %365 : vector<8xf32> to vector<8x1xf32>
    %cst_153 = arith.constant 3.200000e+01 : f32
    %367 = vector.broadcast %cst_153 : f32 to vector<8x1xf32>
    %368 = arith.divf %366, %367 : vector<8x1xf32>
    %cst_154 = arith.constant 9.99999996E-13 : f32
    %369 = vector.broadcast %cst_154 : f32 to vector<8x1xf32>
    %370 = arith.addf %368, %369 : vector<8x1xf32>
    %371 = math.rsqrt %370 : vector<8x1xf32>
    %372 = vector.broadcast %371 : vector<8x1xf32> to vector<8x32xf32>
    %373 = arith.mulf %363, %372 : vector<8x32xf32>
    %374 = vector.broadcast %355 : vector<1x32xf32> to vector<8x32xf32>
    %375 = arith.mulf %373, %374 : vector<8x32xf32>
    %376 = vector.broadcast %357 : vector<1x32xf32> to vector<8x32xf32>
    %377 = arith.addf %375, %376 : vector<8x32xf32>
    %378 = vector.extract_strided_slice %377 {offsets = [0, 0], sizes = [1, 32], strides = [1, 1]} : vector<8x32xf32> to vector<1x32xf32>
    %c0_155 = arith.constant 0 : index
    %c0_156 = arith.constant 0 : index
    %c0_157 = arith.constant 0 : index
    %379 = vector.load %arg17[%c0_155, %c0_156, %c0_157] : memref<1x1x32xf32, #tpu.memory_space<vmem>>, vector<1x1x32xf32>
    %380 = vector.shape_cast %379 : vector<1x1x32xf32> to vector<1x32xf32>
    %381 = vector.shape_cast %378 : vector<1x32xf32> to vector<1x1x32xf32>
    tpu.vector_store %arg17[%c0_155, %c0_156, %c0_157], %381 {strides = array<i32>} : memref<1x1x32xf32, #tpu.memory_space<vmem>>, vector<1x1x32xf32>,
    return
  }
  func.func @transform_0(%arg0: i32) -> (i32, i32) {
    %c0_i32 = arith.constant 0 : i32
    %c0_i32_0 = arith.constant 0 : i32
    return %arg0, %c0_i32 : i32, i32
  }
  func.func @transform_1(%arg0: i32) -> (i32, i32, i32) {
    %c0_i32 = arith.constant 0 : i32
    %c0_i32_0 = arith.constant 0 : i32
    %c0_i32_1 = arith.constant 0 : i32
    return %arg0, %c0_i32, %c0_i32_0 : i32, i32, i32
  }
  func.func @transform_2(%arg0: i32) -> (i32, i32) {
    %c0_i32 = arith.constant 0 : i32
    %c0_i32_0 = arith.constant 0 : i32
    %c0_i32_1 = arith.constant 0 : i32
    return %c0_i32, %c0_i32_0 : i32, i32
  }
  func.func @transform_3(%arg0: i32) -> (i32, i32) {
    %c0_i32 = arith.constant 0 : i32
    %c0_i32_0 = arith.constant 0 : i32
    %c0_i32_1 = arith.constant 0 : i32
    return %c0_i32, %c0_i32_0 : i32, i32
  }
  func.func @transform_4(%arg0: i32) -> (i32, i32, i32) {
    %c0_i32 = arith.constant 0 : i32
    %c0_i32_0 = arith.constant 0 : i32
    %c0_i32_1 = arith.constant 0 : i32
    %c0_i32_2 = arith.constant 0 : i32
    return %c0_i32, %c0_i32_0, %c0_i32_1 : i32, i32, i32
  }
  func.func @transform_5(%arg0: i32) -> (i32, i32, i32) {
    %c0_i32 = arith.constant 0 : i32
    %c0_i32_0 = arith.constant 0 : i32
    %c0_i32_1 = arith.constant 0 : i32
    %c0_i32_2 = arith.constant 0 : i32
    return %c0_i32, %c0_i32_0, %c0_i32_1 : i32, i32, i32
  }
  func.func @transform_6(%arg0: i32) -> (i32, i32, i32) {
    %c0_i32 = arith.constant 0 : i32
    %c0_i32_0 = arith.constant 0 : i32
    %c0_i32_1 = arith.constant 0 : i32
    %c0_i32_2 = arith.constant 0 : i32
    return %c0_i32, %c0_i32_0, %c0_i32_1 : i32, i32, i32
  }
  func.func @transform_7(%arg0: i32) -> (i32, i32, i32) {
    %c0_i32 = arith.constant 0 : i32
    %c0_i32_0 = arith.constant 0 : i32
    %c0_i32_1 = arith.constant 0 : i32
    %c0_i32_2 = arith.constant 0 : i32
    return %c0_i32, %c0_i32_0, %c0_i32_1 : i32, i32, i32
  }
  func.func @transform_8(%arg0: i32) -> (i32, i32, i32) {
    %c0_i32 = arith.constant 0 : i32
    %c0_i32_0 = arith.constant 0 : i32
    %c0_i32_1 = arith.constant 0 : i32
    %c0_i32_2 = arith.constant 0 : i32
    return %c0_i32, %c0_i32_0, %c0_i32_1 : i32, i32, i32
  }
  func.func @transform_9(%arg0: i32) -> (i32, i32, i32) {
    %c0_i32 = arith.constant 0 : i32
    %c0_i32_0 = arith.constant 0 : i32
    %c0_i32_1 = arith.constant 0 : i32
    %c0_i32_2 = arith.constant 0 : i32
    return %c0_i32, %c0_i32_0, %c0_i32_1 : i32, i32, i32
  }
  func.func @transform_10(%arg0: i32) -> (i32, i32, i32) {
    %c0_i32 = arith.constant 0 : i32
    %c0_i32_0 = arith.constant 0 : i32
    %c0_i32_1 = arith.constant 0 : i32
    %c0_i32_2 = arith.constant 0 : i32
    return %c0_i32, %c0_i32_0, %c0_i32_1 : i32, i32, i32
  }
  func.func @transform_11(%arg0: i32) -> (i32, i32, i32) {
    %c0_i32 = arith.constant 0 : i32
    %c0_i32_0 = arith.constant 0 : i32
    %c0_i32_1 = arith.constant 0 : i32
    %c0_i32_2 = arith.constant 0 : i32
    return %c0_i32, %c0_i32_0, %c0_i32_1 : i32, i32, i32
  }
  func.func @transform_12(%arg0: i32) -> (i32, i32, i32) {
    %c0_i32 = arith.constant 0 : i32
    %c0_i32_0 = arith.constant 0 : i32
    %c0_i32_1 = arith.constant 0 : i32
    %c0_i32_2 = arith.constant 0 : i32
    return %c0_i32, %c0_i32_0, %c0_i32_1 : i32, i32, i32
  }
  func.func @transform_13(%arg0: i32) -> (i32, i32, i32) {
    %c0_i32 = arith.constant 0 : i32
    %c0_i32_0 = arith.constant 0 : i32
    %c0_i32_1 = arith.constant 0 : i32
    %c0_i32_2 = arith.constant 0 : i32
    return %c0_i32, %c0_i32_0, %c0_i32_1 : i32, i32, i32
  }
  func.func @transform_14(%arg0: i32) -> (i32, i32, i32) {
    %c0_i32 = arith.constant 0 : i32
    %c0_i32_0 = arith.constant 0 : i32
    %c0_i32_1 = arith.constant 0 : i32
    %c0_i32_2 = arith.constant 0 : i32
    return %c0_i32, %c0_i32_0, %c0_i32_1 : i32, i32, i32
  }
  func.func @transform_15(%arg0: i32) -> (i32, i32, i32) {
    %c0_i32 = arith.constant 0 : i32
    %c0_i32_0 = arith.constant 0 : i32
    %c0_i32_1 = arith.constant 0 : i32
    %c0_i32_2 = arith.constant 0 : i32
    return %c0_i32, %c0_i32_0, %c0_i32_1 : i32, i32, i32
  }
  func.func @transform_16(%arg0: i32) -> (i32, i32, i32) {
    %c0_i32 = arith.constant 0 : i32
    %c0_i32_0 = arith.constant 0 : i32
    %c0_i32_1 = arith.constant 0 : i32
    return %arg0, %c0_i32, %c0_i32_0 : i32, i32, i32
  }
}

</mosaic_0001>

<bundles_post_ra>
// kernel: txt_encoder_forward.1
= control target key start
LH: loop header
LB: loop body
LE: loop exit
PB: predicated region body
PF: predicated region fallthrough
CT: control target
= control target key end

     0   :  { %s2466_s0 = inlined_call_operand.vmem [shape: f32[16,32], index: 0, kind: input, shape index: {}]   ;;  %s2467_s1 = inlined_call_operand.vmem [shape: f32[2,1,8], index: 1, kind: input, shape index: {}]   ;;  %s2468_s2 = inlined_call_operand.vmem [shape: f32[1,32], index: 2, kind: input, shape index: {}]   ;;  %s2469_s3 = inlined_call_operand.vmem [shape: f32[1,32], index: 3, kind: input, shape index: {}]   ;;  %s2470_s4 = inlined_call_operand.vmem [shape: f32[2,32,96], index: 4, kind: input, shape index: {}]   ;;  %s2471_s5 = inlined_call_operand.vmem [shape: f32[2,1,96], index: 5, kind: input, shape index: {}]   ;;  %s2472_s6 = inlined_call_operand.vmem [shape: f32[2,32,32], index: 6, kind: input, shape index: {}]   ;;  %s2473_s7 = inlined_call_operand.vmem [shape: f32[2,1,32], index: 7, kind: input, shape index: {}]   ;;  %s2474_s8 = inlined_call_operand.vmem [shape: f32[2,1,32], index: 8, kind: input, shape index: {}]   ;;  %s2475_s9 = inlined_call_operand.vmem [shape: f32[2,1,32], index: 9, kind: input, shape index: {}]   ;;  %s2476_s10 = inlined_call_operand.vmem [shape: f32[2,32,64], index: 10, kind: input, shape index: {}]   ;;  %s2477_s11 = inlined_call_operand.vmem [shape: f32[2,1,64], index: 11, kind: input, shape index: {}]   ;;  %s2478_s12 = inlined_call_operand.vmem [shape: f32[2,64,32], index: 12, kind: input, shape index: {}]   ;;  %s2479_s13 = inlined_call_operand.vmem [shape: f32[2,1,32], index: 13, kind: input, shape index: {}]   ;;  %s2480_s14 = inlined_call_operand.vmem [shape: f32[2,1,32], index: 14, kind: input, shape index: {}]   ;;  %s2481_s15 = inlined_call_operand.vmem [shape: f32[2,1,32], index: 15, kind: input, shape index: {}]   ;;  %s2482_s16 = inlined_call_operand.hbm [shape: f32[2,1,32], index: 16, kind: output, shape index: {}]  }
   0x1   :  { %2496 = sst [smem:[#allocation8_spill]] %s2466_s0 }
   0x2   :  { %2497 = sst [smem:[#allocation9_spill]] %s2467_s1 }
   0x3   :  { %2498 = sst [smem:[#allocation10_spill]] %s2468_s2 }
   0x4   :  { %21 = vsyncpa [#allocation3], 0 }
   0x5   :  { %23 = vsyncpa [#allocation3 + $0x1], 0  ;;  %s2034_s21 = smov 0   ;;  %s2036_s22 = smov 0  }
   0x6   :  { %s2038_s23 = smov 0   ;;  %s2040_s24 = smov 0  }
   0x7 LB: > { %2499 = sst [smem:[#allocation5_spill]] %s1934_s23  ;;  %s2055_s25 = sadd.s32 4294967295, %s1938_s24   ;;  %s1938_s24 = sphi %s2040_s24, %s2516_s24   ;;  %s1934_s23 = sphi %s2038_s23, %s2518_s23   ;;  %s1930_s22 = sphi %s2036_s22, %s2520_s22   ;;  %s1926_s21 = sphi %s2034_s21, %s2519_s21  }
   0x8   : > { %s1682_s26 = sadd.s32 4294967294, %s1938_s24   ;;  %s2059_s27 = sadd.s32 1, %s1938_s24  }
   0x9   : > { %2500 = sst [smem:[#allocation6_spill]] %s2059_s27  ;;  %s382_s28 = sadd.s32 1, %s1934_s23 }
   0xa   : > { %s379_s29 = ssub.s32 %s1938_s24, %s2059_s27  ;;  %p392_p0 = scmp.ne.s32.totalorder %s1934_s23, %s1930_s22 }
   0xb   : > { %p380_p1 = scmp.eq.s32.totalorder %s379_s29, 0  ;;  %p393_p2 = scmp.eq.s32.totalorder %s2055_s25, 1 }
   0xc   : > { %p398_p3 = scmp.ne.s32.totalorder %s1930_s22, %s1926_s21  ;;  %p399_p4 = scmp.eq.s32.totalorder %s1682_s26, 1 }
   0xd   : > { %s2070_s30 = scalar_select %p380_p1, %s1934_s23, %s382_s28  }
   0xe   : > { %p2072_p5 = por %p393_p2, %p392_p0  ;;  %p2076_p6 = por %p399_p4, %p398_p3 }
   0xf   : > { %2501 = sst [smem:[#allocation7_spill]] %s2070_s30  ;;  %p1685_p7 = scmp.ge.s32.totalorder %s1938_s24, 1 }
  0x10   : > { %p472_p8 = scmp.lt.s32.totalorder %s1938_s24, 3 }
  0x12   : > { %p473_p9 = pnand %p1685_p7, %p472_p8 }
  0x13   : > { %p523_p10 = scmp.lt.s32.totalorder (!%p473_p9), %s2055_s25, 1  ;;  %s2504_s1 = sld [smem:[#allocation9_spill]] (!%p473_p9) }
  0x14   : > { %476 = sbr.rel (%p473_p9) target bundleno = 4265 (0x10a9), region = 84  ;;  %s2505_s23 = sld [smem:[#allocation8_spill]] (!%p473_p9) }
  0x15   : > { %s2506_s2 = sld [smem:[#allocation10_spill]] (!%p473_p9)  ;;  %s2490_s26 = smov (!%p473_p9), 104  }
  0x16   : > { %s2491_s29 = smov (!%p473_p9), 120   ;;  %s2486_s20 = smov (!%p473_p9), 64  }
  0x17   : > { %s2494_s28 = smov (!%p473_p9), 16   ;;  %s2495_s30 = smov (!%p473_p9), 24  }
  0x19   : > { %s2084_s18 = scalar_select %p523_p10, %s2055_s25, 1  ;;  %vm533_vm0 = vcmask 261120   ;;  %v1940_v2 = vmov 32.0   ;;  %v575_v14 = vld [vmem:[%s2470_s4 + $0x18] sm:$0xff]  ;;  %v574_v15 = vld [vmem:[%s2470_s4 + $0x10] sm:$0xff]  ;;  %v573_v16 = vld [vmem:[%s2470_s4 + $0x8] sm:$0xff] }
  0x1a   : > { %1828 = vrcp.f32 %v1940_v2  ;;  %595 = vmatpush.msra.mxu0 %v575_v14  ;;  %v572_v17 = vld [vmem:[%s2470_s4] sm:$0xff]  ;;  %vm612_vm5 = vcmask 64512   ;;  %vm887_vm6 = vcmask 130048   ;;  %vm889_vm7 = vcmask 195584  }
  0x1b   : > { %s1686_s19 = sshll.u32 %s2084_s18, 3  ;;  %v1810_v27 = vld [vmem:[%s2506_s2] ss:$0 sm:$0xff]  ;;  %vm1028_vm11 = vcmask 523264  }
  0x1c   : > { %s526_s27 = scalar_lea.vmem %s2505_s23, %s1686_s19  ;;  %596 = vmatpush.msra.mxu0 %v574_v15  ;;  %v1811_v30 = vld [vmem:[%s2469_s3] ss:$0 sm:$0xff]  ;;  %s2488_s23 = smov 96  }
  0x1d   : > { %v530_v0 = vld [vmem:[%s526_s27] sm:$0xff]  ;;  %s2492_s27 = smov 112   ;;  %s2507_s19 = scalar_lea.vmem %s2504_s1, %s2084_s18 }
  0x1e   : > { %v534_v1 = vsel %vm533_vm0, %v530_v0, 0.0  ;;  %597 = vmatpush.msra.mxu0 %v573_v16  ;;  %v1812_v33 = vld [vmem:[%s2471_s5] ss:$0 sm:$0xff]  ;;  %s2493_s18 = smov 8   ;;  %s2510_s1 = smov 104  }
  0x1f   : > { %535 = vadd.xlane.f32.xlu0 %v534_v1  ;;  %v2160_v44 = vld [vmem:[%s2507_s19] ss:$0 sm:$0xff]  ;;  %s2515_s19 = smov 24  }
  0x20   : > { %v1829_v3 = vpop.eup %1828  ;;  %598 = vmatpush.msra.mxu0 %v572_v17 }
  0x21   : > { %v538_v4 = vmul.f32 32.0, %v1829_v3  ;;  %vm542_vm1 = vweird.f32 %v1829_v3 }
  0x23   : > { %v539_v5 = vsub.f32 1.0, %v538_v4 }
  0x25   : > { %v540_v6 = vmul.f32 %v1829_v3, %v539_v5 }
  0x27   : > { %v541_v7 = vadd.f32 %v1829_v3, %v540_v6 }
  0x29   : > { %v2095_v8 = vsel %vm542_vm1, %v1829_v3, %v541_v7 }
  0x92   : > { %v536_v9 = vpop.xlane.xlu0 %535 }
  0x93   : > { %v544_v10 = vmul.f32 %v2095_v8, %v536_v9 }
  0x95   : > { %v545_v11 = vsub.f32 %v530_v0, %v544_v10 }
  0x97   : > { %v546_v12 = vmul.f32 %v545_v11, %v545_v11 }
  0x99   : > { %v547_v13 = vsel %vm533_vm0, %v546_v12, 0.0 }
  0x9a   : > { %548 = vadd.xlane.f32.xlu0 %v547_v13 }
 0x10d   : > { %v549_v18 = vpop.xlane.xlu0 %548 }
 0x10e   : > { %v550_v19 = vmul.f32 %v549_v18, %v2095_v8 }
 0x110   : > { %v551_v20 = vadd.f32 1e-12, %v550_v19 }
 0x112   : > { %1830 = vrsqrt.f32 %v551_v20  ;;  %vm558_vm3 = vweird.f32 %v551_v20 }
 0x118   : > { %v1831_v21 = vpop.eup %1830 }
 0x119   : > { %v553_v22 = vmul.f32 %v1831_v21, %v551_v20  ;;  %vm559_vm2 = vweird.f32 %v1831_v21 }
 0x11a   : > { %vm560_vm4 = vmor %vm558_vm3, %vm559_vm2 }
 0x11b   : > { %v554_v23 = vmul.f32 %v1831_v21, %v553_v22 }
 0x11d   : > { %v555_v24 = vmul.f32 0.5, %v554_v23 }
 0x11f   : > { %v556_v25 = vsub.f32 1.5, %v555_v24 }
 0x121   : > { %v557_v26 = vmul.f32 %v1831_v21, %v556_v25 }
 0x123   : > { %v561_v28 = vsel %vm560_vm4, %v1831_v21, %v557_v26 }
 0x124   : > { %v562_v29 = vmul.f32 %v561_v28, %v545_v11 }
 0x126   : > { %v566_v31 = vmul.f32 %v1810_v27, %v562_v29 }
 0x128   : > { %v2118_v32 = vadd.f32 %v1811_v30, %v566_v31 }
 0x12a   : > { %1687 = vmatmul.msk.f32.vlgmr.msra.gmra.mxu0 %vm533_vm0, %v2118_v32 }
 0x1a7   : > { %v600_v34 = vpop.f32.mrf.mxu0 }
 0x1a8   : > { %v2125_v35 = vadd.f32 %v1812_v33, %v600_v34 }
 0x1aa   : > { %608 = vrot.lane.b32.xlu2 %v2125_v35, %s2490_s26  ;;  %604 = vrot.lane.b32.xlu1 %v2125_v35, %s2491_s29 }
 0x1b2   : > { %610 = vrot.lane.b32.xlu2 %v2125_v35, %s2488_s23  ;;  %606 = vrot.lane.b32.xlu1 %v2125_v35, %s2492_s27  ;;  %s2509_s27 = smov 120  }
 0x204   : > { %v2135_v36 = vpop.permute.xlu2 %608 }
 0x205   : > { %689 = vrot.lane.b32.xlu2 %v2135_v36, %s2488_s23 }
 0x20c   : > { %v611_v37 = vpop.permute.xlu2 %610 }
 0x20d   : > { %1688 = vmatpush.xpose.msk.msra.mxu2 %vm612_vm5, %v611_v37 }
 0x210   : > { %1689 = vmatmul.msk.f32.vlgmr.msra.gmra.mxu2 %vm612_vm5, %v2125_v35 }
 0x21c   : > { %v605_v38 = vpop.permute.xlu1 %604 }
 0x21d   : > { %637 = vrot.lane.b32.xlu0 %v605_v38, %s2488_s23 }
 0x224   : > { %v2143_v39 = vpop.permute.xlu1 %606 }
 0x225   : > { %663 = vrot.lane.b32.xlu1 %v2143_v39, %s2488_s23  ;;  %v1799_v18 = vpack.i.bf16 %v2135_v36, %v2143_v39  ;;  %s2508_s23 = smov 112  }
 0x25f   : > { %v690_v40 = vpop.permute.xlu2 %689 }
 0x260   : > { %1694 = vmatpush.xpose.msk.msra.mxu1 %vm612_vm5, %v690_v40  ;;  %v893_v40 = vld [vmem:[%s2472_s6 + $0x10] sm:$0xff] }
 0x263   : > { %1695 = vmatmul.msk.f32.vlgmr.msra.gmra.mxu1 %vm612_vm5, %v2135_v36 }
 0x28f   : > { %v638_v41 = vpop.permute.xlu0 %637 }
 0x290   : > { %1690 = vmatpush.xpose.msk.msrb.mxu2 %vm612_vm5, %v638_v41  ;;  %v892_v41 = vld [vmem:[%s2472_s6 + $0x8] sm:$0xff] }
 0x293   : > { %1691 = vmatmul.msk.f32.vlgmr.msrb.gmra.mxu2 %vm612_vm5, %v605_v38  ;;  %v634_v48 = vpop.f32.mrf.mxu2 }
 0x294   : > { %v715_v56 = vmul.f32 0.35355338, %v634_v48 }
 0x296   : > { %v722_v58 = vadd.f32 %v2160_v44, %v715_v56 }
 0x297   : > { %v664_v42 = vpop.permute.xlu1 %663 }
 0x298   : > { %1692 = vmatpush.xpose.msk.msra.mxu3 %vm612_vm5, %v664_v42  ;;  %v726_v59 = vsel %vm612_vm5, %v722_v58, -inf  ;;  %v891_v42 = vld [vmem:[%s2472_s6] sm:$0xff] }
 0x29b   : > { %1693 = vmatmul.msk.f32.vlgmr.msra.gmra.mxu3 %vm612_vm5, %v2143_v39  ;;  %v894_v39 = vld [vmem:[%s2472_s6 + $0x18] sm:$0xff] }
 0x2e0   : > { %v712_v43 = vpop.f32.mrf.mxu1 }
 0x2e1   : > { %v718_v45 = vmul.f32 0.35355338, %v712_v43 }
 0x2e3   : > { %v725_v46 = vadd.f32 %v2160_v44, %v718_v45 }
 0x2e5   : > { %v735_v47 = vsel %vm612_vm5, %v725_v46, -inf }
 0x2e6   : > { %736 = vmax.xlane.f32.xlu0 %v735_v47 }
 0x2fa   : > { %796 = vrot.lane.b32.xlu0 %v605_v38, %s2486_s20 }
 0x316   : > { %v660_v49 = vpop.f32.mrf.mxu2 }
 0x317   : > { %v716_v50 = vmul.f32 0.35355338, %v660_v49 }
 0x319   : > { %v723_v51 = vadd.f32 %v2160_v44, %v716_v50 }
 0x31b   : > { %v729_v52 = vsel %vm612_vm5, %v723_v51, -inf }
 0x31c   : > { %730 = vmax.xlane.f32.xlu1 %v729_v52 }
 0x31e   : > { %v686_v53 = vpop.f32.mrf.mxu3 }
 0x31f   : > { %v717_v54 = vmul.f32 0.35355338, %v686_v53 }
 0x321   : > { %v724_v55 = vadd.f32 %v2160_v44, %v717_v54 }
 0x323   : > { %v732_v57 = vsel %vm612_vm5, %v724_v55, -inf }
 0x324   : > { %733 = vmax.xlane.f32.xlu2 %v732_v57 }
 0x32c   : > { %727 = vmax.xlane.f32.xlu2 %v726_v59 }
 0x359   : > { %v737_v60 = vpop.xlane.xlu0 %736 }
 0x35a   : > { %v741_v61 = vsub.f32 %v725_v46, %v737_v60 }
 0x35c   : > { %v748_v62 = vmul.f32 1.442695, %v741_v61  ;;  %v958_v61 = vld [vmem:[%s2476_s10 + $0x18] sm:$0xff] }
 0x35e   : > { %1832 = vpow2.f32 %v748_v62  ;;  %v956_v62 = vld [vmem:[%s2476_s10 + $0x8] sm:$0xff] }
 0x364   : > { %v1833_v63 = vpop.eup %1832 }
 0x365   : > { %v759_v0 = vsel %vm612_vm5, %v1833_v63, 0.0 }
 0x366   : > { %760 = vadd.xlane.f32.xlu1 %v759_v0 }
 0x36c   : > { %v797_v1 = vpop.permute.xlu0 %796 }
 0x36d   : > { %817 = vmatpush.msrb.mxu3 %v797_v1 }
 0x36f   : > { %978 = vmatpush.msra.mxu3 %v958_v61 }
 0x38f   : > { %v731_v2 = vpop.xlane.xlu1 %730 }
 0x390   : > { %v739_v3 = vsub.f32 %v723_v51, %v731_v2  ;;  %v1813_v51 = vld [vmem:[%s2473_s7] ss:$0 sm:$0xff] }
 0x392   : > { %v744_v4 = vmul.f32 1.442695, %v739_v3 }
 0x394   : > { %1834 = vpow2.f32 %v744_v4 }
 0x397   : > { %v734_v5 = vpop.xlane.xlu2 %733 }
 0x398   : > { %v740_v6 = vsub.f32 %v724_v55, %v734_v5 }
 0x39a   : > { %v1835_v7 = vpop.eup %1834  ;;  %v746_v9 = vmul.f32 1.442695, %v740_v6 }
 0x39b   : > { %v753_v10 = vsel %vm612_vm5, %v1835_v7, 0.0 }
 0x39c   : > { %1836 = vpow2.f32 %v746_v9  ;;  %754 = vadd.xlane.f32.xlu1 %v753_v10  ;;  %v1814_v10 = vld [vmem:[%s2474_s8] ss:$0 sm:$0xff] }
 0x39f   : > { %v728_v11 = vpop.xlane.xlu2 %727 }
 0x3a0   : > { %v738_v12 = vsub.f32 %v722_v58, %v728_v11 }
 0x3a2   : > { %v1837_v13 = vpop.eup %1836  ;;  %v742_v14 = vmul.f32 1.442695, %v738_v12 }
 0x3a3   : > { %v756_v15 = vsel %vm612_vm5, %v1837_v13, 0.0 }
 0x3a4   : > { %1838 = vpow2.f32 %v742_v14  ;;  %757 = vadd.xlane.f32.xlu2 %v756_v15 }
 0x3aa   : > { %v1839_v16 = vpop.eup %1838 }
 0x3ab   : > { %v750_v17 = vsel %vm612_vm5, %v1839_v16, 0.0 }
 0x3ac   : > { %751 = vadd.xlane.f32.xlu1 %v750_v17  ;;  %v1022_v17 = vld [vmem:[%s2478_s12 + $0x30] sm:$0xff] }
 0x3bc   : > { %1800 = vrot.lane.b32.xlu2 %v1799_v18, %s2486_s20  ;;  %v1816_v18 = vld [vmem:[%s2477_s11] ss:$0 sm:$0xff] }
 0x3c5   : > { %770 = vrot.lane.b32.xlu1 %v2125_v35, %s2486_s20  ;;  %s2512_s20 = smov 64  }
 0x3d9   : > { %v761_v19 = vpop.xlane.xlu1 %760 }
 0x40f   : > { %v755_v20 = vpop.xlane.xlu1 %754 }
 0x410   : > { %1840 = vrcp.f32 %v755_v20  ;;  %v1020_v20 = vld [vmem:[%s2478_s12 + $0x20] sm:$0xff] }
 0x411   : > { %1842 = vrcp.f32 %v761_v19  ;;  %v1021_v19 = vld [vmem:[%s2478_s12 + $0x28] sm:$0xff] }
 0x416   : > { %v1841_v21 = vpop.eup %1840 }
 0x417   : > { %v758_v22 = vpop.xlane.xlu2 %757  ;;  %v767_v23 = vmul.f32 %v1841_v21, %v1835_v7  ;;  %v1843_v24 = vpop.eup %1842 }
 0x418   : > { %1844 = vrcp.f32 %v758_v22  ;;  %v769_v30 = vmul.f32 %v1843_v24, %v1833_v63  ;;  %v955_v63 = vld [vmem:[%s2476_s10] sm:$0xff] }
 0x419   : > { %1697 = vmatmul.msk.f32.vlgmr.msrb.gmra.mxu3 %vm612_vm5, %v767_v23  ;;  %v1019_v23 = vld [vmem:[%s2478_s12 + $0x18] sm:$0xff] }
 0x41e   : > { %v1845_v25 = vpop.eup %1844 }
 0x41f   : > { %v1801_v26 = vpop.permute.xlu2 %1800  ;;  %v768_v29 = vmul.f32 %v1845_v25, %v1837_v13  ;;  %v752_v31 = vpop.xlane.xlu1 %751  ;;  %v1815_v13 = vld [vmem:[%s2475_s9] ss:$0 sm:$0xff]  ;;  %v1018_v25 = vld [vmem:[%s2478_s12 + $0x10] sm:$0xff] }
 0x420   : > { %v1802_v27 = vunpack.i.l.bf16 %v1801_v26  ;;  %v1803_v28 = vunpack.i.h.bf16 %v1801_v26  ;;  %1846 = vrcp.f32 %v752_v31 }
 0x422   : > { %843 = vmatpush.msrb.mxu0 %v1802_v27  ;;  %869 = vmatpush.msrb.mxu1 %v1803_v28  ;;  %v1017_v27 = vld [vmem:[%s2478_s12 + $0x8] sm:$0xff] }
 0x423   : > { %1698 = vmatmul.msk.f32.vlgmr.msrb.gmra.mxu0 %vm612_vm5, %v768_v29  ;;  %1699 = vmatmul.msk.f32.vlgmr.msrb.gmra.mxu1 %vm612_vm5, %v769_v30  ;;  %v1016_v29 = vld [vmem:[%s2478_s12] sm:$0xff] }
 0x426   : > { %v1847_v33 = vpop.eup %1846 }
 0x427   : > { %v766_v34 = vmul.f32 %v1847_v33, %v1839_v16  ;;  %v1023_v16 = vld [vmem:[%s2478_s12 + $0x38] sm:$0xff] }
 0x428   : > { %1040 = vmatpush.msra.mxu0 %v1023_v16 }
 0x42a   : > { %1041 = vmatpush.msra.mxu0 %v1022_v17  ;;  %v1818_v17 = vld [vmem:[%s2480_s14] ss:$0 sm:$0xff] }
 0x42c   : > { %1042 = vmatpush.msra.mxu0 %v1021_v19 }
 0x42e   : > { %1043 = vmatpush.msra.mxu0 %v1020_v20  ;;  %v1819_v20 = vld [vmem:[%s2481_s15] ss:$0 sm:$0xff] }
 0x430   : > { %1044 = vmatpush.msra.mxu0 %v1019_v23  ;;  %v1820_v23 = vld [vmem:[%s2471_s5 + $0x1] ss:$0 sm:$0xff] }
 0x432   : > { %1045 = vmatpush.msra.mxu0 %v1018_v25 }
 0x434   : > { %1046 = vmatpush.msra.mxu0 %v1017_v27 }
 0x436   : > { %1047 = vmatpush.msra.mxu0 %v1016_v29 }
 0x437   : > { %v771_v35 = vpop.permute.xlu1 %770 }
 0x438   : > { %791 = vmatpush.msra.mxu2 %v771_v35 }
 0x439   : > { %1696 = vmatmul.msk.f32.vlgmr.msra.gmra.mxu2 %vm612_vm5, %v766_v34 }
 0x43a   : > { %914 = vmatpush.msrb.mxu2 %v894_v39 }
 0x43c   : > { %915 = vmatpush.msrb.mxu2 %v893_v40 }
 0x43e   : > { %916 = vmatpush.msrb.mxu2 %v892_v41 }
 0x440   : > { %917 = vmatpush.msrb.mxu2 %v891_v42 }
 0x49c   : > { %v819_v36 = vpop.f32.mrf.mxu3 }
 0x49d   : > { %875 = vrot.lane.b32.xlu0 %v819_v36, %s2493_s18  ;;  %s2513_s18 = smov 16  }
 0x4a0   : > { %v845_v37 = vpop.f32.mrf.mxu0  ;;  %v871_v38 = vpop.f32.mrf.mxu1 }
 0x4a1   : > { %879 = vrot.lane.b32.xlu2 %v845_v37, %s2494_s28  ;;  %s2514_s28 = smov 8  }
 0x4a5   : > { %883 = vrot.lane.b32.xlu0 %v871_v38, %s2495_s30  ;;  %s2511_s30 = smov 96  }
 0x4bc   : > { %v793_v45 = vpop.f32.mrf.mxu2 }
 0x4fb   : > { %v880_v47 = vpop.permute.xlu2 %879 }
 0x50f   : > { %v876_v43 = vpop.permute.xlu0 %875 }
 0x510   : > { %v886_v46 = vsel %vm612_vm5, %v793_v45, %v876_v43 }
 0x511   : > { %v888_v49 = vsel %vm887_vm6, %v886_v46, %v880_v47 }
 0x517   : > { %v884_v48 = vpop.permute.xlu0 %883 }
 0x518   : > { %v890_v50 = vsel %vm889_vm7, %v888_v49, %v884_v48 }
 0x519   : > { %1700 = vmatmul.msk.f32.vlgmr.msrb.gmra.mxu2 %vm533_vm0, %v890_v50 }
 0x59c   : > { %v919_v52 = vpop.f32.mrf.mxu2 }
 0x59d   : > { %v920_v53 = vadd.f32 %v1813_v51, %v919_v52 }
 0x59f   : > { %v922_v54 = vadd.f32 %v920_v53, %v2118_v32  ;;  %v957_v32 = vld [vmem:[%s2476_s10 + $0x10] sm:$0xff] }
 0x5a0   : > { %979 = vmatpush.msra.mxu3 %v957_v32 }
 0x5a1   : > { %v925_v55 = vsel %vm533_vm0, %v922_v54, 0.0 }
 0x5a2   : > { %926 = vadd.xlane.f32.xlu2 %v925_v55  ;;  %980 = vmatpush.msra.mxu3 %v956_v62 }
 0x5a4   : > { %981 = vmatpush.msra.mxu3 %v955_v63 }
 0x615   : > { %v927_v56 = vpop.xlane.xlu2 %926 }
 0x616   : > { %v928_v57 = vmul.f32 %v927_v56, %v2095_v8 }
 0x618   : > { %v929_v58 = vsub.f32 %v922_v54, %v928_v57 }
 0x61a   : > { %v930_v59 = vmul.f32 %v929_v58, %v929_v58 }
 0x61c   : > { %v931_v60 = vsel %vm533_vm0, %v930_v59, 0.0 }
 0x61d   : > { %932 = vadd.xlane.f32.xlu0 %v931_v60 }
 0x690   : > { %v933_v0 = vpop.xlane.xlu0 %932 }
 0x691   : > { %v934_v1 = vmul.f32 %v933_v0, %v2095_v8 }
 0x693   : > { %v935_v2 = vadd.f32 1e-12, %v934_v1 }
 0x695   : > { %1848 = vrsqrt.f32 %v935_v2  ;;  %vm942_vm9 = vweird.f32 %v935_v2 }
 0x69b   : > { %v1849_v3 = vpop.eup %1848 }
 0x69c   : > { %v937_v4 = vmul.f32 %v1849_v3, %v935_v2  ;;  %vm943_vm8 = vweird.f32 %v1849_v3 }
 0x69d   : > { %vm944_vm10 = vmor %vm942_vm9, %vm943_vm8 }
 0x69e   : > { %v938_v5 = vmul.f32 %v1849_v3, %v937_v4  ;;  %v1706_v4 = vld [vmem:[%s2470_s4 + $0x30] sm:$0xff] }
 0x6a0   : > { %v939_v6 = vmul.f32 0.5, %v938_v5  ;;  %v1705_v5 = vld [vmem:[%s2470_s4 + $0x28] sm:$0xff] }
 0x6a2   : > { %v940_v7 = vsub.f32 1.5, %v939_v6  ;;  %v1704_v6 = vld [vmem:[%s2470_s4 + $0x20] sm:$0xff] }
 0x6a4   : > { %v941_v9 = vmul.f32 %v1849_v3, %v940_v7 }
 0x6a6   : > { %v945_v11 = vsel %vm944_vm10, %v1849_v3, %v941_v9  ;;  %v1707_v3 = vld [vmem:[%s2470_s4 + $0x38] sm:$0xff] }
 0x6a7   : > { %v946_v12 = vmul.f32 %v945_v11, %v929_v58  ;;  %v1817_v58 = vld [vmem:[%s2479_s13] ss:$0 sm:$0xff]  ;;  %1110 = vmatpush.msra.mxu1 %v1707_v3 }
 0x6a9   : > { %v950_v14 = vmul.f32 %v1814_v10, %v946_v12  ;;  %1111 = vmatpush.msra.mxu1 %v1706_v4 }
 0x6ab   : > { %v954_v15 = vadd.f32 %v1815_v13, %v950_v14  ;;  %1112 = vmatpush.msra.mxu1 %v1705_v5 }
 0x6ad   : > { %1701 = vmatmul.msk.f32.vlgmr.msra.gmra.mxu3 %vm533_vm0, %v954_v15  ;;  %1113 = vmatpush.msra.mxu1 %v1704_v6 }
 0x730   : > { %v983_v21 = vpop.f32.mrf.mxu3 }
 0x731   : > { %v984_v22 = vadd.f32 %v1816_v18, %v983_v21 }
 0x733   : > { %v987_v24 = vmul.f32 0.70710677, %v984_v22  ;;  %v986_v55 = vmul.f32 0.5, %v984_v22 }
 0x735   : > { %v1702_v26 = vclamps-f32 %v987_v24, 4.0 }
 0x737   : > { %v990_v28 = vmul.f32 %v1702_v26, %v1702_v26 }
 0x739   : > { %v991_v30 = vmul.f32 -2.7261424e-10, %v990_v28  ;;  %v1004_v31 = vmul.f32 -1.45660715e-05, %v990_v28 }
 0x73b   : > { %v992_v33 = vadd.f32 2.7706815e-08, %v991_v30  ;;  %v1005_v34 = vadd.f32 -0.00021337405, %v1004_v31 }
 0x73d   : > { %v993_v35 = vmul.f32 %v992_v33, %v990_v28  ;;  %v1006_v36 = vmul.f32 %v1005_v34, %v990_v28 }
 0x73f   : > { %v994_v37 = vadd.f32 -2.101024e-06, %v993_v35  ;;  %v1007_v38 = vadd.f32 -0.001682827, %v1006_v36 }
 0x741   : > { %v995_v39 = vmul.f32 %v994_v37, %v990_v28  ;;  %v1008_v40 = vmul.f32 %v1007_v38, %v990_v28 }
 0x743   : > { %v996_v41 = vadd.f32 -5.6925062e-05, %v995_v39  ;;  %v1009_v42 = vadd.f32 -0.0073733293, %v1008_v40 }
 0x745   : > { %v997_v43 = vmul.f32 %v996_v41, %v990_v28  ;;  %v1010_v45 = vmul.f32 %v1009_v42, %v990_v28 }
 0x747   : > { %v998_v46 = vadd.f32 -0.00073499064, %v997_v43  ;;  %v1011_v47 = vadd.f32 -0.014264739, %v1010_v45 }
 0x749   : > { %v999_v48 = vmul.f32 %v998_v46, %v990_v28  ;;  %1850 = vrcp.f32 %v1011_v47 }
 0x74b   : > { %v1000_v49 = vadd.f32 -0.0029546, %v999_v48 }
 0x74d   : > { %v1001_v50 = vmul.f32 %v1000_v49, %v990_v28 }
 0x74f   : > { %v1002_v51 = vadd.f32 -0.016096033, %v1001_v50  ;;  %v1851_v53 = vpop.eup %1850 }
 0x751   : > { %v1003_v52 = vmul.f32 %v1702_v26, %v1002_v51 }
 0x753   : > { %v1013_v54 = vmul.f32 %v1851_v53, %v1003_v52 }
 0x755   : > { %v1014_v56 = vadd.f32 1.0, %v1013_v54 }
 0x757   : > { %v1015_v57 = vmul.f32 %v1014_v56, %v986_v55 }
 0x759   : > { %1703 = vmatmul.msk.f32.vlgmr.msra.gmra.mxu0 %vm1028_vm11, %v1015_v57 }
 0x7d6   : > { %v1049_v59 = vpop.f32.mrf.mxu0 }
 0x7d7   : > { %v1050_v60 = vadd.f32 %v1817_v58, %v1049_v59 }
 0x7d9   : > { %v1052_v61 = vadd.f32 %v1050_v60, %v954_v15 }
 0x7db   : > { %v1055_v32 = vsel %vm533_vm0, %v1052_v61, 0.0 }
 0x7dc   : > { %1056 = vadd.xlane.f32.xlu1 %v1055_v32 }
 0x84f   : > { %v1057_v62 = vpop.xlane.xlu1 %1056 }
 0x850   : > { %v1058_v63 = vmul.f32 %v1057_v62, %v2095_v8 }
 0x852   : > { %v1059_v0 = vsub.f32 %v1052_v61, %v1058_v63 }
 0x854   : > { %v1060_v1 = vmul.f32 %v1059_v0, %v1059_v0 }
 0x856   : > { %v1061_v2 = vsel %vm533_vm0, %v1060_v1, 0.0 }
 0x857   : > { %1062 = vadd.xlane.f32.xlu2 %v1061_v2 }
 0x8ca   : > { %v1063_v7 = vpop.xlane.xlu2 %1062 }
 0x8cb   : > { %v1064_v9 = vmul.f32 %v1063_v7, %v2095_v8 }
 0x8cd   : > { %v1065_v10 = vadd.f32 1e-12, %v1064_v9 }
 0x8cf   : > { %1852 = vrsqrt.f32 %v1065_v10  ;;  %vm1072_vm13 = vweird.f32 %v1065_v10 }
 0x8d5   : > { %v1853_v11 = vpop.eup %1852 }
 0x8d6   : > { %v1067_v12 = vmul.f32 %v1853_v11, %v1065_v10  ;;  %vm1073_vm12 = vweird.f32 %v1853_v11 }
 0x8d7   : > { %vm1074_vm14 = vmor %vm1072_vm13, %vm1073_vm12 }
 0x8d8   : > { %v1068_v13 = vmul.f32 %v1853_v11, %v1067_v12 }
 0x8da   : > { %v1069_v14 = vmul.f32 0.5, %v1068_v13 }
 0x8dc   : > { %v1070_v15 = vsub.f32 1.5, %v1069_v14 }
 0x8de   : > { %v1071_v16 = vmul.f32 %v1853_v11, %v1070_v15 }
 0x8e0   : > { %v1075_v18 = vsel %vm1074_vm14, %v1853_v11, %v1071_v16 }
 0x8e1   : > { %v1076_v19 = vmul.f32 %v1075_v18, %v1059_v0 }
 0x8e3   : > { %v1080_v21 = vmul.f32 %v1818_v17, %v1076_v19 }
 0x8e5   : > { %v2283_v22 = vadd.f32 %v1819_v20, %v1080_v21 }
 0x8e7   : > { %1709 = vmatmul.msk.f32.vlgmr.msra.gmra.mxu1 %vm533_vm0, %v2283_v22 }
 0x964   : > { %v1115_v24 = vpop.f32.mrf.mxu1 }
 0x965   : > { %v2290_v25 = vadd.f32 %v1820_v23, %v1115_v24 }
 0x967   : > { %1121 = vrot.lane.b32.xlu2 %v2290_v25, %s2508_s23  ;;  %1119 = vrot.lane.b32.xlu1 %v2290_v25, %s2509_s27  ;;  %s521_s23 = sand.u32 1, %s1930_s22  }
 0x968   : > { %1123 = vrot.lane.b32.xlu0 %v2290_v25, %s2510_s1  ;;  %s522_s26 = scalar_lea.vmem [#allocation2], %s521_s23  ;;  %s1606_s27 = scalar_lea.sflag [#allocation3], %s521_s23 }
 0x969   : > { %s1616_s29 = sshll.u32 %s522_s26, 4  ;;  %s1617_s29 = int_to_ptr.vmem [resolvable:$true] %s1616_s29 }
 0x970   : > { %1125 = vrot.lane.b32.xlu0 %v2290_v25, %s2511_s30 }
 0x9c1   : > { %v2300_v26 = vpop.permute.xlu2 %1121 }
 0x9c2   : > { %1177 = vrot.lane.b32.xlu2 %v2300_v26, %s2511_s30 }
 0x9d9   : > { %v2304_v27 = vpop.permute.xlu1 %1119 }
 0x9da   : > { %v2306_v28 = vpop.permute.xlu0 %1123  ;;  %1151 = vrot.lane.b32.xlu0 %v2304_v27, %s2511_s30 }
 0x9db   : > { %1203 = vrot.lane.b32.xlu1 %v2306_v28, %s2511_s30  ;;  %v1804_v5 = vpack.i.bf16 %v2304_v27, %v2306_v28 }
 0x9e2   : > { %v1126_v29 = vpop.permute.xlu0 %1125 }
 0x9e3   : > { %1710 = vmatpush.xpose.msk.msra.mxu2 %vm612_vm5, %v1126_v29  ;;  %v1724_v29 = vld [vmem:[%s2472_s6 + $0x30] sm:$0xff] }
 0x9e6   : > { %1711 = vmatmul.msk.f32.vlgmr.msra.gmra.mxu2 %vm612_vm5, %v2290_v25 }
 0xa1c   : > { %v1178_v30 = vpop.permute.xlu2 %1177 }
 0xa1d   : > { %1714 = vmatpush.xpose.msk.msrb.mxu1 %vm612_vm5, %v1178_v30  ;;  %v1723_v30 = vld [vmem:[%s2472_s6 + $0x28] sm:$0xff] }
 0xa20   : > { %1715 = vmatmul.msk.f32.vlgmr.msrb.gmra.mxu1 %vm612_vm5, %v2300_v26 }
 0xa4c   : > { %v1152_v31 = vpop.permute.xlu0 %1151 }
 0xa4d   : > { %v1204_v33 = vpop.permute.xlu1 %1203  ;;  %1712 = vmatpush.xpose.msk.msrb.mxu3 %vm612_vm5, %v1152_v31  ;;  %v1722_v31 = vld [vmem:[%s2472_s6 + $0x20] sm:$0xff] }
 0xa4e   : > { %1716 = vmatpush.xpose.msk.msrb.mxu2 %vm612_vm5, %v1204_v33 }
 0xa50   : > { %1713 = vmatmul.msk.f32.vlgmr.msrb.gmra.mxu3 %vm612_vm5, %v2304_v27 }
 0xa51   : > { %1717 = vmatmul.msk.f32.vlgmr.msrb.gmra.mxu2 %vm612_vm5, %v2306_v28  ;;  %v1725_v28 = vld [vmem:[%s2472_s6 + $0x38] sm:$0xff] }
 0xa69   : > { %v1148_v38 = vpop.f32.mrf.mxu2 }
 0xa6a   : > { %v1229_v47 = vmul.f32 0.35355338, %v1148_v38 }
 0xa6c   : > { %v1233_v49 = vadd.f32 %v2160_v44, %v1229_v47 }
 0xa6e   : > { %v1237_v50 = vsel %vm612_vm5, %v1233_v49, -inf }
 0xa9d   : > { %v1200_v34 = vpop.f32.mrf.mxu1 }
 0xa9e   : > { %v1231_v35 = vmul.f32 0.35355338, %v1200_v34 }
 0xaa0   : > { %v1235_v36 = vadd.f32 %v2160_v44, %v1231_v35 }
 0xaa2   : > { %v1243_v37 = vsel %vm612_vm5, %v1235_v36, -inf }
 0xaa3   : > { %1244 = vmax.xlane.f32.xlu2 %v1243_v37 }
 0xad3   : > { %v1174_v39 = vpop.f32.mrf.mxu3 }
 0xad4   : > { %v1230_v40 = vmul.f32 0.35355338, %v1174_v39  ;;  %v1226_v41 = vpop.f32.mrf.mxu2 }
 0xad5   : > { %v1232_v42 = vmul.f32 0.35355338, %v1226_v41 }
 0xad6   : > { %v1234_v43 = vadd.f32 %v2160_v44, %v1230_v40  ;;  %v1821_v40 = vld [vmem:[%s2473_s7 + $0x1] ss:$0 sm:$0xff] }
 0xad7   : > { %v1236_v45 = vadd.f32 %v2160_v44, %v1232_v42 }
 0xad8   : > { %v1240_v46 = vsel %vm612_vm5, %v1234_v43, -inf }
 0xad9   : > { %v1246_v48 = vsel %vm612_vm5, %v1236_v45, -inf  ;;  %1241 = vmax.xlane.f32.xlu0 %v1240_v46 }
 0xada   : > { %1247 = vmax.xlane.f32.xlu1 %v1246_v48 }
 0xae2   : > { %1238 = vmax.xlane.f32.xlu1 %v1237_v50 }
 0xb16   : > { %v1245_v51 = vpop.xlane.xlu2 %1244 }
 0xb17   : > { %v1251_v52 = vsub.f32 %v1235_v36, %v1245_v51  ;;  %v1733_v51 = vld [vmem:[%s2476_s10 + $0x38] sm:$0xff] }
 0xb19   : > { %v1257_v53 = vmul.f32 1.442695, %v1251_v52  ;;  %v1731_v52 = vld [vmem:[%s2476_s10 + $0x28] sm:$0xff] }
 0xb1b   : > { %1854 = vpow2.f32 %v1257_v53  ;;  %v1730_v53 = vld [vmem:[%s2476_s10 + $0x20] sm:$0xff] }
 0xb21   : > { %v1855_v54 = vpop.eup %1854 }
 0xb22   : > { %v1267_v55 = vsel %vm612_vm5, %v1855_v54, 0.0 }
 0xb23   : > { %1268 = vadd.xlane.f32.xlu1 %v1267_v55 }
 0xb4c   : > { %v1242_v56 = vpop.xlane.xlu0 %1241 }
 0xb4d   : > { %v1248_v57 = vpop.xlane.xlu1 %1247  ;;  %v1250_v58 = vsub.f32 %v1234_v43, %v1242_v56 }
 0xb4e   : > { %v1252_v59 = vsub.f32 %v1236_v45, %v1248_v57 }
 0xb4f   : > { %v1255_v60 = vmul.f32 1.442695, %v1250_v58 }
 0xb50   : > { %v1259_v61 = vmul.f32 1.442695, %v1252_v59 }
 0xb51   : > { %1856 = vpow2.f32 %v1255_v60 }
 0xb52   : > { %1858 = vpow2.f32 %v1259_v61 }
 0xb55   : > { %v1239_v44 = vpop.xlane.xlu1 %1238 }
 0xb56   : > { %v1249_v32 = vsub.f32 %v1233_v49, %v1239_v44 }
 0xb57   : > { %v1857_v62 = vpop.eup %1856 }
 0xb58   : > { %v1859_v63 = vpop.eup %1858  ;;  %v1253_v0 = vmul.f32 1.442695, %v1249_v32  ;;  %v1264_v1 = vsel %vm612_vm5, %v1857_v62, 0.0  ;;  %v1822_v32 = vld [vmem:[%s2474_s8 + $0x1] ss:$0 sm:$0xff] }
 0xb59   : > { %v1270_v2 = vsel %vm612_vm5, %v1859_v63, 0.0  ;;  %1265 = vadd.xlane.f32.xlu2 %v1264_v1 }
 0xb5a   : > { %1860 = vpow2.f32 %v1253_v0  ;;  %1271 = vadd.xlane.f32.xlu0 %v1270_v2  ;;  %v1823_v0 = vld [vmem:[%s2475_s9 + $0x1] ss:$0 sm:$0xff] }
 0xb60   : > { %v1861_v3 = vpop.eup %1860 }
 0xb61   : > { %v1261_v4 = vsel %vm612_vm5, %v1861_v3, 0.0 }
 0xb62   : > { %1262 = vadd.xlane.f32.xlu1 %v1261_v4  ;;  %v1743_v4 = vld [vmem:[%s2478_s12 + $0x70] sm:$0xff] }
 0xb6e   : > { %1805 = vrot.lane.b32.xlu0 %v1804_v5, %s2512_s20  ;;  %v1824_v5 = vld [vmem:[%s2477_s11 + $0x1] ss:$0 sm:$0xff] }
 0xb71   : > { %1333 = vrot.lane.b32.xlu2 %v2300_v26, %s2512_s20 }
 0xb7b   : > { %1281 = vrot.lane.b32.xlu1 %v2290_v25, %s2512_s20 }
 0xb96   : > { %v1269_v6 = vpop.xlane.xlu1 %1268 }
 0xb97   : > { %1862 = vrcp.f32 %v1269_v6  ;;  %v1742_v6 = vld [vmem:[%s2478_s12 + $0x68] sm:$0xff] }
 0xb9d   : > { %v1863_v9 = vpop.eup %1862 }
 0xb9e   : > { %v1279_v10 = vmul.f32 %v1863_v9, %v1855_v54 }
 0xbcc   : > { %v1266_v7 = vpop.xlane.xlu2 %1265 }
 0xbcd   : > { %v1272_v12 = vpop.xlane.xlu0 %1271  ;;  %1864 = vrcp.f32 %v1266_v7  ;;  %v1741_v7 = vld [vmem:[%s2478_s12 + $0x60] sm:$0xff] }
 0xbce   : > { %1866 = vrcp.f32 %v1272_v12 }
 0xbd3   : > { %v1865_v13 = vpop.eup %1864 }
 0xbd4   : > { %v1334_v11 = vpop.permute.xlu2 %1333  ;;  %v1867_v14 = vpop.eup %1866  ;;  %v1278_v19 = vmul.f32 %v1865_v13, %v1857_v62  ;;  %v1739_v13 = vld [vmem:[%s2478_s12 + $0x50] sm:$0xff] }
 0xbd5   : > { %1354 = vmatpush.msra.mxu1 %v1334_v11  ;;  %v1263_v16 = vpop.xlane.xlu1 %1262  ;;  %v1280_v20 = vmul.f32 %v1867_v14, %v1859_v63  ;;  %v1740_v11 = vld [vmem:[%s2478_s12 + $0x58] sm:$0xff] }
 0xbd6   : > { %1720 = vmatmul.msk.f32.vlgmr.msra.gmra.mxu1 %vm612_vm5, %v1279_v10  ;;  %1868 = vrcp.f32 %v1263_v16 }
 0xbdc   : > { %v1869_v21 = vpop.eup %1868 }
 0xbdd   : > { %v1277_v23 = vmul.f32 %v1869_v21, %v1861_v3  ;;  %v1744_v3 = vld [vmem:[%s2478_s12 + $0x78] sm:$0xff] }
 0xbde   : > { %1556 = vmatpush.msrb.mxu1 %v1744_v3 }
 0xbe0   : > { %v1806_v15 = vpop.permute.xlu0 %1805  ;;  %1557 = vmatpush.msrb.mxu1 %v1743_v4 }
 0xbe1   : > { %v1808_v17 = vunpack.i.h.bf16 %v1806_v15  ;;  %v1807_v18 = vunpack.i.l.bf16 %v1806_v15  ;;  %v1738_v15 = vld [vmem:[%s2478_s12 + $0x48] sm:$0xff] }
 0xbe2   : > { %1558 = vmatpush.msrb.mxu1 %v1742_v6 }
 0xbe3   : > { %1328 = vmatpush.msrb.mxu0 %v1808_v17  ;;  %1380 = vmatpush.msra.mxu2 %v1807_v18  ;;  %v1737_v17 = vld [vmem:[%s2478_s12 + $0x40] sm:$0xff] }
 0xbe4   : > { %1719 = vmatmul.msk.f32.vlgmr.msrb.gmra.mxu0 %vm612_vm5, %v1278_v19  ;;  %1721 = vmatmul.msk.f32.vlgmr.msra.gmra.mxu2 %vm612_vm5, %v1280_v20 }
 0xbe5   : > { %1493 = vmatpush.msra.mxu0 %v1733_v51  ;;  %1559 = vmatpush.msrb.mxu1 %v1741_v7 }
 0xbe7   : > { %1560 = vmatpush.msrb.mxu1 %v1740_v11 }
 0xbe9   : > { %1561 = vmatpush.msrb.mxu1 %v1739_v13 }
 0xbeb   : > { %1562 = vmatpush.msrb.mxu1 %v1738_v15 }
 0xbed   : > { %v1282_v24 = vpop.permute.xlu1 %1281  ;;  %1563 = vmatpush.msrb.mxu1 %v1737_v17 }
 0xbee   : > { %1302 = vmatpush.msra.mxu3 %v1282_v24 }
 0xbef   : > { %1718 = vmatmul.msk.f32.vlgmr.msra.gmra.mxu3 %vm612_vm5, %v1277_v23 }
 0xbf0   : > { %1425 = vmatpush.msrb.mxu3 %v1725_v28 }
 0xbf2   : > { %1426 = vmatpush.msrb.mxu3 %v1724_v29 }
 0xbf4   : > { %1427 = vmatpush.msrb.mxu3 %v1723_v30 }
 0xbf6   : > { %1428 = vmatpush.msrb.mxu3 %v1722_v31 }
 0xc53   : > { %v1356_v25 = vpop.f32.mrf.mxu1 }
 0xc54   : > { %1390 = vrot.lane.b32.xlu2 %v1356_v25, %s2513_s18  ;;  %s1614_s18 = scalar_lea.hbm %s2482_s16, %s2055_s25 }
 0xc55   : > { %s1618_s2 = sshll.u32 %s1614_s18, 4  ;;  %s1619_s2 = int_to_ptr.hbm [resolvable:$true] %s1618_s2 }
 0xc56   : > { %s1890_s1 = sshra.s32 %s1619_s2, 4  ;;  %s1891_s1 = int_to_ptr.hbm [resolvable:$true] %s1890_s1 }
 0xc57   : > { %s1892_s25 = scalar_lea.hbm %s1891_s1, 1  ;;  %p1897_p0 = scmp.lt.s32.totalorder %s1891_s1, %s2482_s16 }
 0xc58   : > { %p1893_p11 = scmp.ne.s32.totalorder %s1891_s1, %s1892_s25 }
 0xc5a   : > { %p1894_p12 = pnand %p1893_p11, %p2072_p5 }
 0xc5c   : > { %p1895_p13 = pneg %p1894_p12 }
 0xc61   : > { %v1330_v26 = vpop.f32.mrf.mxu0 }
 0xc62   : > { %1386 = vrot.lane.b32.xlu0 %v1330_v26, %s2514_s28  ;;  %s1896_s28 = scalar_lea.hbm %s2482_s16, 2 }
 0xc63   : > { %p1898_p1 = scmp.lt.s32.totalorder %s1896_s28, %s1892_s25 }
 0xc65   : > { %p1899_p2 = por %p1898_p1, %p1897_p0 }
 0xc67   : > { %v1382_v27 = vpop.f32.mrf.mxu2  ;;  %p1900_p3 = pnand %p1899_p2, %p1895_p13 }
 0xc6a   : > { %1394 = vrot.lane.b32.xlu0 %v1382_v27, %s2515_s19 }
 0xc72   : > { %v1304_v34 = vpop.f32.mrf.mxu3 }
 0xcae   : > { %v1391_v36 = vpop.permute.xlu2 %1390 }
 0xcd4   : > { %v1387_v33 = vpop.permute.xlu0 %1386 }
 0xcd5   : > { %v1397_v35 = vsel %vm612_vm5, %v1304_v34, %v1387_v33 }
 0xcd6   : > { %v1398_v37 = vsel %vm887_vm6, %v1397_v35, %v1391_v36 }
 0xcdc   : > { %v1395_v38 = vpop.permute.xlu0 %1394 }
 0xcdd   : > { %v1399_v39 = vsel %vm889_vm7, %v1398_v37, %v1395_v38 }
 0xcde   : > { %1727 = vmatmul.msk.f32.vlgmr.msrb.gmra.mxu3 %vm533_vm0, %v1399_v39 }
 0xd61   : > { %v1430_v41 = vpop.f32.mrf.mxu3 }
 0xd62   : > { %v1431_v42 = vadd.f32 %v1821_v40, %v1430_v41 }
 0xd64   : > { %v1433_v43 = vadd.f32 %v1431_v42, %v2283_v22  ;;  %v1732_v22 = vld [vmem:[%s2476_s10 + $0x30] sm:$0xff] }
 0xd65   : > { %1494 = vmatpush.msra.mxu0 %v1732_v22 }
 0xd66   : > { %v1438_v45 = vsel %vm533_vm0, %v1433_v43, 0.0 }
 0xd67   : > { %1439 = vadd.xlane.f32.xlu2 %v1438_v45  ;;  %1495 = vmatpush.msra.mxu0 %v1731_v52 }
 0xd69   : > { %1496 = vmatpush.msra.mxu0 %v1730_v53 }
 0xdda   : > { %v1440_v46 = vpop.xlane.xlu2 %1439 }
 0xddb   : > { %v1441_v47 = vmul.f32 %v1440_v46, %v2095_v8 }
 0xddd   : > { %v1442_v48 = vsub.f32 %v1433_v43, %v1441_v47  ;;  %v1825_v47 = vld [vmem:[%s2479_s13 + $0x1] ss:$0 sm:$0xff] }
 0xddf   : > { %v1443_v49 = vmul.f32 %v1442_v48, %v1442_v48 }
 0xde1   : > { %v1444_v50 = vsel %vm533_vm0, %v1443_v49, 0.0 }
 0xde2   : > { %1445 = vadd.xlane.f32.xlu0 %v1444_v50 }
 0xe55   : > { %v1446_v54 = vpop.xlane.xlu0 %1445 }
 0xe56   : > { %v1447_v55 = vmul.f32 %v1446_v54, %v2095_v8 }
 0xe58   : > { %v1448_v56 = vadd.f32 1e-12, %v1447_v55 }
 0xe5a   : > { %1870 = vrsqrt.f32 %v1448_v56  ;;  %vm1455_vm1 = vweird.f32 %v1448_v56 }
 0xe60   : > { %v1871_v57 = vpop.eup %1870 }
 0xe61   : > { %v1450_v58 = vmul.f32 %v1871_v57, %v1448_v56  ;;  %vm1456_vm15 = vweird.f32 %v1871_v57 }
 0xe62   : > { %vm1457_vm2 = vmor %vm1455_vm1, %vm1456_vm15 }
 0xe63   : > { %v1451_v59 = vmul.f32 %v1871_v57, %v1450_v58 }
 0xe65   : > { %v1452_v60 = vmul.f32 0.5, %v1451_v59 }
 0xe67   : > { %v1453_v61 = vsub.f32 1.5, %v1452_v60 }
 0xe69   : > { %v1454_v44 = vmul.f32 %v1871_v57, %v1453_v61 }
 0xe6b   : > { %v1458_v62 = vsel %vm1457_vm2, %v1871_v57, %v1454_v44 }
 0xe6c   : > { %v1459_v63 = vmul.f32 %v1458_v62, %v1442_v48 }
 0xe6e   : > { %v1463_v1 = vmul.f32 %v1822_v32, %v1459_v63  ;;  %v1826_v63 = vld [vmem:[%s2480_s14 + $0x1] ss:$0 sm:$0xff] }
 0xe70   : > { %v1467_v2 = vadd.f32 %v1823_v0, %v1463_v1  ;;  %v1827_v1 = vld [vmem:[%s2481_s15 + $0x1] ss:$0 sm:$0xff] }
 0xe72   : > { %1735 = vmatmul.msk.f32.vlgmr.msra.gmra.mxu0 %vm533_vm0, %v1467_v2 }
 0xeef   : > { %v1498_v9 = vpop.f32.mrf.mxu0 }
 0xef0   : > { %v1499_v10 = vadd.f32 %v1824_v5, %v1498_v9 }
 0xef2   : > { %v1502_v12 = vmul.f32 0.70710677, %v1499_v10  ;;  %v1501_v43 = vmul.f32 0.5, %v1499_v10 }
 0xef4   : > { %v1736_v14 = vclamps-f32 %v1502_v12, 4.0 }
 0xef6   : > { %v1505_v16 = vmul.f32 %v1736_v14, %v1736_v14 }
 0xef8   : > { %v1506_v18 = vmul.f32 -2.7261424e-10, %v1505_v16  ;;  %v1519_v19 = vmul.f32 -1.45660715e-05, %v1505_v16 }
 0xefa   : > { %v1507_v20 = vadd.f32 2.7706815e-08, %v1506_v18  ;;  %v1520_v21 = vadd.f32 -0.00021337405, %v1519_v19 }
 0xefc   : > { %v1508_v23 = vmul.f32 %v1507_v20, %v1505_v16  ;;  %v1521_v24 = vmul.f32 %v1520_v21, %v1505_v16 }
 0xefe   : > { %v1509_v25 = vadd.f32 -2.101024e-06, %v1508_v23  ;;  %v1522_v26 = vadd.f32 -0.001682827, %v1521_v24 }
 0xf00   : > { %v1510_v27 = vmul.f32 %v1509_v25, %v1505_v16  ;;  %v1523_v28 = vmul.f32 %v1522_v26, %v1505_v16 }
 0xf02   : > { %v1511_v29 = vadd.f32 -5.6925062e-05, %v1510_v27  ;;  %v1524_v30 = vadd.f32 -0.0073733293, %v1523_v28 }
 0xf04   : > { %v1512_v31 = vmul.f32 %v1511_v29, %v1505_v16  ;;  %v1525_v33 = vmul.f32 %v1524_v30, %v1505_v16 }
 0xf06   : > { %v1513_v34 = vadd.f32 -0.00073499064, %v1512_v31  ;;  %v1526_v35 = vadd.f32 -0.014264739, %v1525_v33 }
 0xf08   : > { %v1514_v36 = vmul.f32 %v1513_v34, %v1505_v16  ;;  %1872 = vrcp.f32 %v1526_v35 }
 0xf0a   : > { %v1515_v37 = vadd.f32 -0.0029546, %v1514_v36 }
 0xf0c   : > { %v1516_v38 = vmul.f32 %v1515_v37, %v1505_v16 }
 0xf0e   : > { %v1517_v39 = vadd.f32 -0.016096033, %v1516_v38  ;;  %v1873_v41 = vpop.eup %1872 }
 0xf10   : > { %v1518_v40 = vmul.f32 %v1736_v14, %v1517_v39 }
 0xf12   : > { %v1528_v42 = vmul.f32 %v1873_v41, %v1518_v40 }
 0xf14   : > { %v1529_v45 = vadd.f32 1.0, %v1528_v42 }
 0xf16   : > { %v1530_v46 = vmul.f32 %v1529_v45, %v1501_v43 }
 0xf18   : > { %1746 = vmatmul.msk.f32.vlgmr.msrb.gmra.mxu1 %vm1028_vm11, %v1530_v46 }
 0xf95   : > { %v1565_v48 = vpop.f32.mrf.mxu1 }
 0xf96   : > { %v1566_v49 = vadd.f32 %v1825_v47, %v1565_v48 }
 0xf98   : > { %v1568_v50 = vadd.f32 %v1566_v49, %v1467_v2 }
 0xf9a   : > { %v1573_v51 = vsel %vm533_vm0, %v1568_v50, 0.0 }
 0xf9b   : > { %1574 = vadd.xlane.f32.xlu1 %v1573_v51 }
0x100e   : > { %v1575_v22 = vpop.xlane.xlu1 %1574 }
0x100f   : > { %v1576_v52 = vmul.f32 %v1575_v22, %v2095_v8 }
0x1011   : > { %v1577_v53 = vsub.f32 %v1568_v50, %v1576_v52 }
0x1013   : > { %v1578_v54 = vmul.f32 %v1577_v53, %v1577_v53 }
0x1015   : > { %v1579_v55 = vsel %vm533_vm0, %v1578_v54, 0.0  ;;  %vm1603_vm0 = vcmask 253952  }
0x1016   : > { %1580 = vadd.xlane.f32.xlu2 %v1579_v55 }
0x1089   : > { %v1581_v56 = vpop.xlane.xlu2 %1580 }
0x108a   : > { %v1582_v57 = vmul.f32 %v1581_v56, %v2095_v8 }
0x108c   : > { %v1583_v58 = vadd.f32 1e-12, %v1582_v57 }
0x108e   : > { %1874 = vrsqrt.f32 %v1583_v58  ;;  %vm1590_vm4 = vweird.f32 %v1583_v58 }
0x1094   : > { %v1875_v59 = vpop.eup %1874 }
0x1095   : > { %v1585_v60 = vmul.f32 %v1875_v59, %v1583_v58  ;;  %vm1591_vm3 = vweird.f32 %v1875_v59 }
0x1096   : > { %vm1592_vm5 = vmor %vm1590_vm4, %vm1591_vm3 }
0x1097   : > { %v1586_v61 = vmul.f32 %v1875_v59, %v1585_v60 }
0x1099   : > { %v1587_v44 = vmul.f32 0.5, %v1586_v61 }
0x109b   : > { %v1588_v32 = vsub.f32 1.5, %v1587_v44 }
0x109d   : > { %v1589_v62 = vmul.f32 %v1875_v59, %v1588_v32 }
0x109f   : > { %v1593_v8 = vsel %vm1592_vm5, %v1875_v59, %v1589_v62 }
0x10a0   : > { %v1594_v0 = vmul.f32 %v1593_v8, %v1577_v53 }
0x10a2   : > { %v1598_v2 = vmul.f32 %v1826_v63, %v1594_v0 }
0x10a4   : > { %v1602_v3 = vadd.f32 %v1827_v1, %v1598_v2 }
0x10a6   : > { %1604 = vst.msk [vmem:[%s522_s26] sm:$0x1] %vm1603_vm0, %v1602_v3 }
0x10a7   : > { %1903 = shalt.err (!%p1900_p3)
}
0x10a8   : > { %1751 = dma.vmem_to_hbm [thread:$0]  (%p2072_p5), %s1617_s29, 16, %s1619_s2, %s1606_s27  }
0x10a9 PF: > { %p1757_p4 = scmp.ge.s32.totalorder %s1938_s24, 2  ;;  %s1630_s23 = sand.u32 1, %s1926_s21  }
0x10aa   : > { %s1631_s26 = scalar_lea.sflag [#allocation3], %s1630_s23 }
0x10ab   : > { %p1754_p7 = pnand %p1757_p4, %p2076_p6 }
0x10ad   : > { %p1755_p8 = pneg %p1754_p7 }
0x10af   : > { %1921 = dma.done.wait (%p1755_p8), %s1631_s26, 16  }
0x10b0   : > { %1923 = vsyncadd (%p1755_p8), %s1631_s26, 4294967280  ;;  %s2516_s24 = sld [smem:[#allocation6_spill]]  ;;  %s2519_s21 = smov %s1930_s22 }
0x10b1   : > { %s2517_s1 = sld [smem:[#allocation5_spill]] }
0x10b2   : > { %s2518_s23 = sld [smem:[#allocation7_spill]] }
0x10b6   : > { %p26_p9 = scmp.ge.s32.totalorder %s2516_s24, 4  }
0x10b7   : > { %s2520_s22 = smov %s2517_s1 }
0x10b8   :  { %28 = sbr.rel (!%p26_p9) target bundleno = 7 (0x7), region = 134 }
0x10bd   :  { %1636 = vsyncpa [#allocation3], 1 }
0x10be   :  { %1638 = vsyncpa [#allocation3 + $0x1], 1 }

</bundles_post_ra>
